<compile_context>
chip_gen: v6e
topology: v6e:2x2x1
jax: 0.10.0
libtpu: 0.0.40
codegen_flags: <defaults>
</compile_context>

<pallas_src>
import jax
import jax.numpy as jnp
import numpy as np
from jax import lax
from jax.experimental import pallas as pl
from jax.experimental.pallas import tpu as pltpu

LEAKY_SLOPE = 0.01   # nn.LeakyReLU default
BN_EPS = 1e-5        # nn.BatchNorm2d default


def _leaky_relu(x):
    return jnp.where(x >= 0, x, LEAKY_SLOPE * x)


def _conv3_rowshift(x_dense, bw_ref, bias_row, row_mod, H, dil):
    """3x3 'same' conv with dilation `dil` on a lane-dense (B*H, W*C) activation.

    One MXU matmul per kernel row ky against a (W*C, W*C) block weight (kx taps and
    W zero-padding folded in), then a sublane roll (XLU) + image-boundary row mask to
    realize the ky row shift. The conv bias is folded into the accumulator init.
    """
    BH, WC = x_dense.shape
    acc = jnp.broadcast_to(bias_row, (BH, WC))            # bias folded into acc init
    for ky in range(3):                                   # static, unrolled
        dy = (ky - 1) * dil
        term = jnp.dot(x_dense, bw_ref[ky], preferred_element_type=jnp.float32)
        if dy == 0:
            acc = acc + term
        else:
            # out[r] += term[r + dy] when row (r mod H) + dy stays inside the image.
            shifted = pltpu.roll(term, shift=(-dy) % BH, axis=0)
            valid = (row_mod < H - dy) if dy > 0 else (row_mod >= -dy)
            acc = acc + jnp.where(valid, shifted, 0.0)
    return acc


def _batchnorm_dense(y, gb_ref, fold_ref, spread_ref, inv_n):
    """Training-mode BatchNorm2d on a lane-dense (B*H, W*C) activation.

    Single-pass stats (fine at this size; use shifted/two-pass when tiling — see TODO):
    per-column sum & sum-of-squares stacked into ONE (2, W*C) fold matmul; the
    per-channel scale/shift stacked into ONE (2, C) spread matmul.
    """
    col = jnp.concatenate([jnp.sum(y, axis=0, keepdims=True),
                           jnp.sum(y * y, axis=0, keepdims=True)], axis=0)   # (2, W*C)
    stats = jnp.dot(col, fold_ref[...], preferred_element_type=jnp.float32) * inv_n  # (2, C)
    mean, e_x2 = stats[0:1], stats[1:2]
    var = e_x2 - mean * mean                               # biased batch variance
    gb = gb_ref[...]                                       # (2, C): gamma / beta
    inv = gb[0:1] * lax.rsqrt(var + BN_EPS)                # (1, C)
    shift = gb[1:2] - mean * inv                           # (1, C)
    ss = jnp.dot(jnp.concatenate([inv, shift], axis=0), spread_ref[...],
                 preferred_element_type=jnp.float32)       # (2, W*C)
    return y * ss[0:1] + ss[1:2]


def _make_kernel(H):
    def kernel(x_ref, bw1_ref, b1_ref, bw2_ref, b2_ref, bw3_ref, b3_ref,
               gb1_ref, gb2_ref, fold_ref, spread_ref, out_ref):
        BH, WC = out_ref.shape
        C = fold_ref.shape[-1]
        inv_n = 1.0 / float(BH * (WC // C))                            # 1 / (B*H*W)
        row_mod = lax.broadcasted_iota(jnp.int32, (BH, 1), 0) % H      # hoisted once

        # ---- conv1 (1x1) + LeakyReLU: one lane-dense MXU matmul (block-diag weight) ----
        shortcut = jnp.dot(x_ref[...], bw1_ref[...], preferred_element_type=jnp.float32)
        shortcut = _leaky_relu(shortcut + b1_ref[...])                 # (B*H, W*C)

        # ---- conv2 (3x3, pad=1) + LeakyReLU + BN (batch stats) ----
        resA = _leaky_relu(_conv3_rowshift(shortcut, bw2_ref, b2_ref[...], row_mod, H, 1))
        resA1 = _batchnorm_dense(resA, gb1_ref, fold_ref, spread_ref, inv_n)

        # ---- conv3 (3x3, dilation=2, pad=2) + LeakyReLU + BN (batch stats) ----
        resA = _leaky_relu(_conv3_rowshift(resA1, bw3_ref, b3_ref[...], row_mod, H, 2))
        resA2 = _batchnorm_dense(resA, gb2_ref, fold_ref, spread_ref, inv_n)

        # ---- residual add + full-lane (unmasked) store in the (B*H, W*C) layout ----
        out_ref[...] = (shortcut + resA2).astype(out_ref.dtype)
    return kernel


# ----------------------------- host-side weight preprocessing -----------------------------

def _block_diag_1x1(w1, W):
    """(Cin, Cout) 1x1-conv weight -> block-diagonal (W*Cin, W*Cout) matrix."""
    cin, cout = w1.shape
    m = np.zeros((W * cin, W * cout), np.float32)
    for w in range(W):
        m[w * cin:(w + 1) * cin, w * cout:(w + 1) * cout] = w1
    return m


def _shifted_block_weights(wk, W, dil):
    """(3,3,Cin,Cout) conv weight -> (3, W*Cin, W*Cout) with W zero-padding baked in.

    bw[ky] folds the three kx taps (shifted by dil columns) and channel mixing; taps
    that would read outside [0, W) are omitted (they only ever multiply zero padding),
    so there is NO lane halo and K is exactly W*Cin.
    """
    kh, kw, cin, cout = wk.shape
    m = np.zeros((kh, W * cin, W * cout), np.float32)
    for ky in range(kh):
        for kx in range(kw):
            for w in range(W):
                wi = w + (kx - 1) * dil
                if 0 <= wi < W:
                    m[ky, wi * cin:(wi + 1) * cin, w * cout:(w + 1) * cout] = wk[ky, kx]
    return m


def res_context_block(x_nhwc, params):
    B, H, W, Cin = x_nhwc.shape
    Cout = params["w1"].shape[-1]
    BH, WC = B * H, W * Cout

    w1 = np.asarray(params["w1"], np.float32)
    bw1 = _block_diag_1x1(w1, W)                                   # (W*Cin, W*Cout)
    bw2 = _shifted_block_weights(np.asarray(params["w2"], np.float32), W, 1)  # (3, W*C, W*C)
    bw3 = _shifted_block_weights(np.asarray(params["w3"], np.float32), W, 2)

    def tile_lanes(v):                                             # (1, C) -> (1, W*C)
        return np.tile(np.asarray(v, np.float32).reshape(1, Cout), (1, W))

    b1t, b2t, b3t = tile_lanes(params["b1"]), tile_lanes(params["b2"]), tile_lanes(params["b3"])

    gb1 = np.concatenate([np.asarray(params["g1"], np.float32).reshape(1, Cout),
                          np.asarray(params["be1"], np.float32).reshape(1, Cout)], axis=0)
    gb2 = np.concatenate([np.asarray(params["g2"], np.float32).reshape(1, Cout),
                          np.asarray(params["be2"], np.float32).reshape(1, Cout)], axis=0)

    # Fold / spread matrices for per-channel BN stats in the lane-dense layout.
    fold = np.tile(np.eye(Cout, dtype=np.float32), (W, 1))         # (W*C, C)
    spread = np.ascontiguousarray(fold.T)                          # (C, W*C)

    x_dense = x_nhwc.reshape(BH, W * Cin)                          # lane-dense input view

    args = (x_dense, jnp.asarray(bw1), jnp.asarray(b1t), jnp.asarray(bw2), jnp.asarray(b2t),
            jnp.asarray(bw3), jnp.asarray(b3t), jnp.asarray(gb1), jnp.asarray(gb2),
            jnp.asarray(fold), jnp.asarray(spread))

    def full_block(shape):
        nd = len(shape)
        return pl.BlockSpec(shape, lambda i, _nd=nd: (0,) * _nd)

    # Advisory cost for XLA scheduling around the custom call.
    flops = 2 * BH * (W * Cin) * WC + 2 * (3 * 2 * BH * WC * WC)
    bytes_accessed = 4 * (x_dense.size + bw1.size + bw2.size + bw3.size + BH * WC)

    out2d = pl.pallas_call(
        _make_kernel(H),
        out_shape=jax.ShapeDtypeStruct((BH, WC), x_nhwc.dtype),
        grid_spec=pltpu.PrefetchScalarGridSpec(
            num_scalar_prefetch=0,
            grid=(1,),
            in_specs=[full_block(a.shape) for a in args],
            out_specs=pl.BlockSpec((BH, WC), lambda i: (0, 0)),
        ),
        compiler_params=pltpu.CompilerParams(dimension_semantics=("arbitrary",)),
        cost_estimate=pl.CostEstimate(flops=int(flops), transcendentals=4 * Cout,
                                      bytes_accessed=int(bytes_accessed)),
    )(*args)
    return out2d.reshape(B, H, W, Cout)


# --------------------------------- pure-JAX reference ---------------------------------

def res_context_ref(x_nhwc, p):
    """Pure-JAX reference (lax convs + training-mode BN) for correctness checking."""
    dn = ('NHWC', 'HWIO', 'NHWC')

    def leaky(v):
        return jnp.where(v >= 0, v, LEAKY_SLOPE * v)

    def bn(v, g, b):
        mean = jnp.mean(v, axis=(0, 1, 2), keepdims=True)
        var = jnp.mean((v - mean) ** 2, axis=(0, 1, 2), keepdims=True)
        return (v - mean) / jnp.sqrt(var + BN_EPS) * g.reshape(1, 1, 1, -1) \
            + b.reshape(1, 1, 1, -1)

    w1_4 = p["w1"].reshape(1, 1, *p["w1"].shape)
    shortcut = lax.conv_general_dilated(
        x_nhwc, w1_4, (1, 1), 'VALID', dimension_numbers=dn) + p["b1"].reshape(1, 1, 1, -1)
    shortcut = leaky(shortcut)

    resA = lax.conv_general_dilated(
        shortcut, p["w2"], (1, 1), ((1, 1), (1, 1)),
        dimension_numbers=dn) + p["b2"].reshape(1, 1, 1, -1)
    resA = leaky(resA)
    resA1 = bn(resA, p["g1"], p["be1"])

    resA = lax.conv_general_dilated(
        resA1, p["w3"], (1, 1), ((2, 2), (2, 2)),
        rhs_dilation=(2, 2), dimension_numbers=dn) + p["b3"].reshape(1, 1, 1, -1)
    resA = leaky(resA)
    resA2 = bn(resA, p["g2"], p["be2"])
    return shortcut + resA2


if __name__ == "__main__":
    B, Cin, H, W = 2, 4, 16, 16   # PyTorch input is NCHW: (B, Cin, H, W)
    Cout = 8                      # -> lane-dense W*Cout = 128

    key = jax.random.PRNGKey(0)
    keys = jax.random.split(key, 12)

    x_nchw = jax.random.normal(keys[0], (B, Cin, H, W), jnp.float32)
    x_nhwc = jnp.transpose(x_nchw, (0, 2, 3, 1))   # kernel layout: NHWC

    params = {
        # conv1 (1x1): (Cin, Cout); biases as (1, Cout) rows.
        "w1": 0.2 * jax.random.normal(keys[1], (Cin, Cout), jnp.float32),
        "b1": 0.1 * jax.random.normal(keys[2], (1, Cout), jnp.float32),
        # conv2 (3x3): (kh, kw, Cout, Cout)
        "w2": 0.1 * jax.random.normal(keys[3], (3, 3, Cout, Cout), jnp.float32),
        "b2": 0.1 * jax.random.normal(keys[4], (1, Cout), jnp.float32),
        # conv3 (3x3, dilation=2)
        "w3": 0.1 * jax.random.normal(keys[5], (3, 3, Cout, Cout), jnp.float32),
        "b3": 0.1 * jax.random.normal(keys[6], (1, Cout), jnp.float32),
        # BatchNorm affine params (training-mode batch stats computed in-kernel).
        "g1": 1.0 + 0.1 * jax.random.normal(keys[7], (1, Cout), jnp.float32),
        "be1": 0.1 * jax.random.normal(keys[8], (1, Cout), jnp.float32),
        "g2": 1.0 + 0.1 * jax.random.normal(keys[9], (1, Cout), jnp.float32),
        "be2": 0.1 * jax.random.normal(keys[10], (1, Cout), jnp.float32),
    }

    out = jax.block_until_ready(res_context_block(x_nhwc, params))
    ref = jax.block_until_ready(res_context_ref(x_nhwc, params))
    np.testing.assert_allclose(np.asarray(out), np.asarray(ref), rtol=1e-4, atol=1e-4)
    print("KERNEL_OK")
</pallas_src>

<mosaic_0001>
module attributes {stable_mosaic.version = 11 : i64} {
  func.func @kernel(%arg0: i32, %arg1: memref<32x64xf32, #tpu.memory_space<vmem>>, %arg2: memref<64x128xf32, #tpu.memory_space<vmem>>, %arg3: memref<1x128xf32, #tpu.memory_space<vmem>>, %arg4: memref<3x128x128xf32, #tpu.memory_space<vmem>>, %arg5: memref<1x128xf32, #tpu.memory_space<vmem>>, %arg6: memref<3x128x128xf32, #tpu.memory_space<vmem>>, %arg7: memref<1x128xf32, #tpu.memory_space<vmem>>, %arg8: memref<2x8xf32, #tpu.memory_space<vmem>>, %arg9: memref<2x8xf32, #tpu.memory_space<vmem>>, %arg10: memref<128x8xf32, #tpu.memory_space<vmem>>, %arg11: memref<8x128xf32, #tpu.memory_space<vmem>>, %arg12: memref<32x128xf32, #tpu.memory_space<vmem>>) attributes {dimension_semantics = [#tpu.dimension_semantics<arbitrary>], iteration_bounds = array<i64: 1>, scalar_prefetch = 0 : i64, scratch_operands = 0 : i64, tpu.core_type = #tpu.core_type<tc>, window_params = [{pipeline_mode = #tpu.pipeline_mode<synchronous>, transform_indices = @transform_0, window_bounds = array<i64: 32, 64>}, {pipeline_mode = #tpu.pipeline_mode<synchronous>, transform_indices = @transform_1, window_bounds = array<i64: 64, 128>}, {pipeline_mode = #tpu.pipeline_mode<synchronous>, transform_indices = @transform_2, window_bounds = array<i64: 1, 128>}, {pipeline_mode = #tpu.pipeline_mode<synchronous>, transform_indices = @transform_3, window_bounds = array<i64: 3, 128, 128>}, {pipeline_mode = #tpu.pipeline_mode<synchronous>, transform_indices = @transform_4, window_bounds = array<i64: 1, 128>}, {pipeline_mode = #tpu.pipeline_mode<synchronous>, transform_indices = @transform_5, window_bounds = array<i64: 3, 128, 128>}, {pipeline_mode = #tpu.pipeline_mode<synchronous>, transform_indices = @transform_6, window_bounds = array<i64: 1, 128>}, {pipeline_mode = #tpu.pipeline_mode<synchronous>, transform_indices = @transform_7, window_bounds = array<i64: 2, 8>}, {pipeline_mode = #tpu.pipeline_mode<synchronous>, transform_indices = @transform_8, window_bounds = array<i64: 2, 8>}, {pipeline_mode = #tpu.pipeline_mode<synchronous>, transform_indices = @transform_9, window_bounds = array<i64: 128, 8>}, {pipeline_mode = #tpu.pipeline_mode<synchronous>, transform_indices = @transform_10, window_bounds = array<i64: 8, 128>}, {pipeline_mode = #tpu.pipeline_mode<synchronous>, transform_indices = @transform_11, window_bounds = array<i64: 32, 128>}]} {
    %0 = tpu.iota {dimensions = array<i32: 0>} : vector<32x1xi32>
    %c16_i32 = arith.constant 16 : i32
    %c0_i32 = arith.constant 0 : i32
    %1 = arith.cmpi eq, %c16_i32, %c0_i32 : i32
    %c1_i32 = arith.constant 1 : i32
    %2 = arith.select %1, %c1_i32, %c16_i32 : i32
    %3 = vector.broadcast %2 : i32 to vector<32x1xi32>
    %4 = arith.remsi %0, %3 : vector<32x1xi32>
    %c0_i32_0 = arith.constant 0 : i32
    %5 = vector.broadcast %c0_i32_0 : i32 to vector<32x1xi32>
    %6 = arith.cmpi ne, %4, %5 : vector<32x1xi32>
    %c0_i32_1 = arith.constant 0 : i32
    %7 = vector.broadcast %c0_i32_1 : i32 to vector<32x1xi32>
    %8 = arith.cmpi slt, %4, %7 : vector<32x1xi32>
    %c0_i32_2 = arith.constant 0 : i32
    %9 = arith.cmpi slt, %2, %c0_i32_2 : i32
    %10 = vector.broadcast %9 : i1 to vector<32x1xi1>
    %11 = vector.broadcast %10 : vector<32x1xi1> to vector<32x1xi1>
    %12 = arith.xori %8, %11 : vector<32x1xi1>
    %13 = arith.andi %12, %6 : vector<32x1xi1>
    %14 = vector.broadcast %2 : i32 to vector<32x1xi32>
    %15 = arith.addi %4, %14 : vector<32x1xi32>
    %16 = arith.select %13, %15, %4 : vector<32x1xi1>, vector<32x1xi32>
    %c0 = arith.constant 0 : index
    %c0_3 = arith.constant 0 : index
    %17 = vector.load %arg1[%c0, %c0_3] : memref<32x64xf32, #tpu.memory_space<vmem>>, vector<32x64xf32>
    %c0_4 = arith.constant 0 : index
    %c0_5 = arith.constant 0 : index
    %18 = vector.load %arg2[%c0_4, %c0_5] : memref<64x128xf32, #tpu.memory_space<vmem>>, vector<64x128xf32>
    %cst = arith.constant dense<0.000000e+00> : vector<32x128xf32>
    %19 = tpu.matmul %17, %18, %cst {dimension_numbers = #tpu.dot_dimension_numbers<[1], [0], [0], [1], [0, 0, 1, 1], [], []>} : vector<32x64xf32>, vector<64x128xf32>, vector<32x128xf32> -> vector<32x128xf32>
    %c0_6 = arith.constant 0 : index
    %c0_7 = arith.constant 0 : index
    %20 = vector.load %arg3[%c0_6, %c0_7] : memref<1x128xf32, #tpu.memory_space<vmem>>, vector<1x128xf32>
    %21 = vector.broadcast %20 : vector<1x128xf32> to vector<32x128xf32>
    %22 = arith.addf %19, %21 : vector<32x128xf32>
    %cst_8 = arith.constant 0.000000e+00 : f32
    %23 = vector.broadcast %cst_8 : f32 to vector<32x128xf32>
    %24 = arith.cmpf oge, %22, %23 : vector<32x128xf32>
    %cst_9 = arith.constant 0.00999999977 : f32
    %25 = vector.broadcast %cst_9 : f32 to vector<32x128xf32>
    %26 = arith.mulf %25, %22 : vector<32x128xf32>
    %27 = arith.select %24, %22, %26 : vector<32x128xi1>, vector<32x128xf32>
    %c0_10 = arith.constant 0 : index
    %c0_11 = arith.constant 0 : index
    %28 = vector.load %arg5[%c0_10, %c0_11] : memref<1x128xf32, #tpu.memory_space<vmem>>, vector<1x128xf32>
    %29 = vector.shape_cast %28 : vector<1x128xf32> to vector<1x128xf32>
    %30 = vector.broadcast %29 : vector<1x128xf32> to vector<32x128xf32>
    %c0_12 = arith.constant 0 : index
    %c0_13 = arith.constant 0 : index
    %c0_14 = arith.constant 0 : index
    %31 = vector.load %arg4[%c0_12, %c0_13, %c0_14] : memref<3x128x128xf32, #tpu.memory_space<vmem>>, vector<1x128x128xf32>
    %32 = vector.shape_cast %31 : vector<1x128x128xf32> to vector<128x128xf32>
    %cst_15 = arith.constant dense<0.000000e+00> : vector<32x128xf32>
    %33 = tpu.matmul %27, %32, %cst_15 {dimension_numbers = #tpu.dot_dimension_numbers<[1], [0], [0], [1], [0, 0, 1, 1], [], []>} : vector<32x128xf32>, vector<128x128xf32>, vector<32x128xf32> -> vector<32x128xf32>
    %c1_i32_16 = arith.constant 1 : i32
    %34 = tpu.dynamic_rotate %33 by %c1_i32_16 dim 0 : vector<32x128xf32>, i32 -> vector<32x128xf32>
    %c1_i32_17 = arith.constant 1 : i32
    %35 = vector.broadcast %c1_i32_17 : i32 to vector<32x1xi32>
    %36 = arith.cmpi sge, %16, %35 : vector<32x1xi32>
    %cst_18 = arith.constant 0.000000e+00 : f32
    %37 = vector.shape_cast %36 : vector<32x1xi1> to vector<32x1xi1>
    %38 = vector.broadcast %37 : vector<32x1xi1> to vector<32x128xi1>
    %39 = vector.broadcast %cst_18 : f32 to vector<32x128xf32>
    %40 = arith.select %38, %34, %39 : vector<32x128xi1>, vector<32x128xf32>
    %41 = arith.addf %30, %40 : vector<32x128xf32>
    %c1 = arith.constant 1 : index
    %c0_19 = arith.constant 0 : index
    %c0_20 = arith.constant 0 : index
    %42 = vector.load %arg4[%c1, %c0_19, %c0_20] : memref<3x128x128xf32, #tpu.memory_space<vmem>>, vector<1x128x128xf32>
    %43 = vector.shape_cast %42 : vector<1x128x128xf32> to vector<128x128xf32>
    %cst_21 = arith.constant dense<0.000000e+00> : vector<32x128xf32>
    %44 = tpu.matmul %27, %43, %cst_21 {dimension_numbers = #tpu.dot_dimension_numbers<[1], [0], [0], [1], [0, 0, 1, 1], [], []>} : vector<32x128xf32>, vector<128x128xf32>, vector<32x128xf32> -> vector<32x128xf32>
    %45 = arith.addf %41, %44 : vector<32x128xf32>
    %c2 = arith.constant 2 : index
    %c0_22 = arith.constant 0 : index
    %c0_23 = arith.constant 0 : index
    %46 = vector.load %arg4[%c2, %c0_22, %c0_23] : memref<3x128x128xf32, #tpu.memory_space<vmem>>, vector<1x128x128xf32>
    %47 = vector.shape_cast %46 : vector<1x128x128xf32> to vector<128x128xf32>
    %cst_24 = arith.constant dense<0.000000e+00> : vector<32x128xf32>
    %48 = tpu.matmul %27, %47, %cst_24 {dimension_numbers = #tpu.dot_dimension_numbers<[1], [0], [0], [1], [0, 0, 1, 1], [], []>} : vector<32x128xf32>, vector<128x128xf32>, vector<32x128xf32> -> vector<32x128xf32>
    %c31_i32 = arith.constant 31 : i32
    %49 = tpu.dynamic_rotate %48 by %c31_i32 dim 0 : vector<32x128xf32>, i32 -> vector<32x128xf32>
    %c15_i32 = arith.constant 15 : i32
    %50 = vector.broadcast %c15_i32 : i32 to vector<32x1xi32>
    %51 = arith.cmpi slt, %16, %50 : vector<32x1xi32>
    %cst_25 = arith.constant 0.000000e+00 : f32
    %52 = vector.shape_cast %51 : vector<32x1xi1> to vector<32x1xi1>
    %53 = vector.broadcast %52 : vector<32x1xi1> to vector<32x128xi1>
    %54 = vector.broadcast %cst_25 : f32 to vector<32x128xf32>
    %55 = arith.select %53, %49, %54 : vector<32x128xi1>, vector<32x128xf32>
    %56 = arith.addf %45, %55 : vector<32x128xf32>
    %cst_26 = arith.constant 0.000000e+00 : f32
    %57 = vector.broadcast %cst_26 : f32 to vector<32x128xf32>
    %58 = arith.cmpf oge, %56, %57 : vector<32x128xf32>
    %cst_27 = arith.constant 0.00999999977 : f32
    %59 = vector.broadcast %cst_27 : f32 to vector<32x128xf32>
    %60 = arith.mulf %59, %56 : vector<32x128xf32>
    %61 = arith.select %58, %56, %60 : vector<32x128xi1>, vector<32x128xf32>
    %cst_28 = arith.constant dense<0.000000e+00> : vector<128xf32>
    %62 = vector.multi_reduction <add>, %61, %cst_28 [0] : vector<32x128xf32> to vector<128xf32>
    %63 = vector.shape_cast %62 : vector<128xf32> to vector<1x128xf32>
    %64 = arith.mulf %61, %61 : vector<32x128xf32>
    %cst_29 = arith.constant dense<0.000000e+00> : vector<128xf32>
    %65 = vector.multi_reduction <add>, %64, %cst_29 [0] : vector<32x128xf32> to vector<128xf32>
    %66 = vector.shape_cast %65 : vector<128xf32> to vector<1x128xf32>
    %67 = tpu.concatenate %63, %66 in 0 : vector<1x128xf32>, vector<1x128xf32> -> vector<2x128xf32>
    %c0_30 = arith.constant 0 : index
    %c0_31 = arith.constant 0 : index
    %68 = vector.load %arg10[%c0_30, %c0_31] : memref<128x8xf32, #tpu.memory_space<vmem>>, vector<128x8xf32>
    %cst_32 = arith.constant dense<0.000000e+00> : vector<2x8xf32>
    %69 = tpu.matmul %67, %68, %cst_32 {dimension_numbers = #tpu.dot_dimension_numbers<[1], [0], [0], [1], [0, 0, 1, 1], [], []>} : vector<2x128xf32>, vector<128x8xf32>, vector<2x8xf32> -> vector<2x8xf32>
    %cst_33 = arith.constant 0.001953125 : f32
    %70 = vector.broadcast %cst_33 : f32 to vector<2x8xf32>
    %71 = arith.mulf %69, %70 : vector<2x8xf32>
    %72 = vector.extract_strided_slice %71 {offsets = [0, 0], sizes = [1, 8], strides = [1, 1]} : vector<2x8xf32> to vector<1x8xf32>
    %73 = vector.extract_strided_slice %71 {offsets = [1, 0], sizes = [1, 8], strides = [1, 1]} : vector<2x8xf32> to vector<1x8xf32>
    %74 = arith.mulf %72, %72 : vector<1x8xf32>
    %75 = arith.subf %73, %74 : vector<1x8xf32>
    %c0_34 = arith.constant 0 : index
    %c0_35 = arith.constant 0 : index
    %76 = vector.load %arg8[%c0_34, %c0_35] : memref<2x8xf32, #tpu.memory_space<vmem>>, vector<2x8xf32>
    %77 = vector.extract_strided_slice %76 {offsets = [0, 0], sizes = [1, 8], strides = [1, 1]} : vector<2x8xf32> to vector<1x8xf32>
    %cst_36 = arith.constant 9.99999974E-6 : f32
    %78 = vector.broadcast %cst_36 : f32 to vector<1x8xf32>
    %79 = arith.addf %75, %78 : vector<1x8xf32>
    %80 = math.rsqrt %79 : vector<1x8xf32>
    %81 = arith.mulf %77, %80 : vector<1x8xf32>
    %82 = vector.extract_strided_slice %76 {offsets = [1, 0], sizes = [1, 8], strides = [1, 1]} : vector<2x8xf32> to vector<1x8xf32>
    %83 = arith.mulf %72, %81 : vector<1x8xf32>
    %84 = arith.subf %82, %83 : vector<1x8xf32>
    %85 = tpu.concatenate %81, %84 in 0 : vector<1x8xf32>, vector<1x8xf32> -> vector<2x8xf32>
    %c0_37 = arith.constant 0 : index
    %c0_38 = arith.constant 0 : index
    %86 = vector.load %arg11[%c0_37, %c0_38] : memref<8x128xf32, #tpu.memory_space<vmem>>, vector<8x128xf32>
    %cst_39 = arith.constant dense<0.000000e+00> : vector<2x128xf32>
    %87 = tpu.matmul %85, %86, %cst_39 {dimension_numbers = #tpu.dot_dimension_numbers<[1], [0], [0], [1], [0, 0, 1, 1], [], []>} : vector<2x8xf32>, vector<8x128xf32>, vector<2x128xf32> -> vector<2x128xf32>
    %88 = vector.extract_strided_slice %87 {offsets = [0, 0], sizes = [1, 128], strides = [1, 1]} : vector<2x128xf32> to vector<1x128xf32>
    %89 = vector.broadcast %88 : vector<1x128xf32> to vector<32x128xf32>
    %90 = arith.mulf %61, %89 : vector<32x128xf32>
    %91 = vector.extract_strided_slice %87 {offsets = [1, 0], sizes = [1, 128], strides = [1, 1]} : vector<2x128xf32> to vector<1x128xf32>
    %92 = vector.broadcast %91 : vector<1x128xf32> to vector<32x128xf32>
    %93 = arith.addf %90, %92 : vector<32x128xf32>
    %c0_40 = arith.constant 0 : index
    %c0_41 = arith.constant 0 : index
    %94 = vector.load %arg7[%c0_40, %c0_41] : memref<1x128xf32, #tpu.memory_space<vmem>>, vector<1x128xf32>
    %95 = vector.shape_cast %94 : vector<1x128xf32> to vector<1x128xf32>
    %96 = vector.broadcast %95 : vector<1x128xf32> to vector<32x128xf32>
    %c0_42 = arith.constant 0 : index
    %c0_43 = arith.constant 0 : index
    %c0_44 = arith.constant 0 : index
    %97 = vector.load %arg6[%c0_42, %c0_43, %c0_44] : memref<3x128x128xf32, #tpu.memory_space<vmem>>, vector<1x128x128xf32>
    %98 = vector.shape_cast %97 : vector<1x128x128xf32> to vector<128x128xf32>
    %cst_45 = arith.constant dense<0.000000e+00> : vector<32x128xf32>
    %99 = tpu.matmul %93, %98, %cst_45 {dimension_numbers = #tpu.dot_dimension_numbers<[1], [0], [0], [1], [0, 0, 1, 1], [], []>} : vector<32x128xf32>, vector<128x128xf32>, vector<32x128xf32> -> vector<32x128xf32>
    %c2_i32 = arith.constant 2 : i32
    %100 = tpu.dynamic_rotate %99 by %c2_i32 dim 0 : vector<32x128xf32>, i32 -> vector<32x128xf32>
    %c2_i32_46 = arith.constant 2 : i32
    %101 = vector.broadcast %c2_i32_46 : i32 to vector<32x1xi32>
    %102 = arith.cmpi sge, %16, %101 : vector<32x1xi32>
    %cst_47 = arith.constant 0.000000e+00 : f32
    %103 = vector.shape_cast %102 : vector<32x1xi1> to vector<32x1xi1>
    %104 = vector.broadcast %103 : vector<32x1xi1> to vector<32x128xi1>
    %105 = vector.broadcast %cst_47 : f32 to vector<32x128xf32>
    %106 = arith.select %104, %100, %105 : vector<32x128xi1>, vector<32x128xf32>
    %107 = arith.addf %96, %106 : vector<32x128xf32>
    %c1_48 = arith.constant 1 : index
    %c0_49 = arith.constant 0 : index
    %c0_50 = arith.constant 0 : index
    %108 = vector.load %arg6[%c1_48, %c0_49, %c0_50] : memref<3x128x128xf32, #tpu.memory_space<vmem>>, vector<1x128x128xf32>
    %109 = vector.shape_cast %108 : vector<1x128x128xf32> to vector<128x128xf32>
    %cst_51 = arith.constant dense<0.000000e+00> : vector<32x128xf32>
    %110 = tpu.matmul %93, %109, %cst_51 {dimension_numbers = #tpu.dot_dimension_numbers<[1], [0], [0], [1], [0, 0, 1, 1], [], []>} : vector<32x128xf32>, vector<128x128xf32>, vector<32x128xf32> -> vector<32x128xf32>
    %111 = arith.addf %107, %110 : vector<32x128xf32>
    %c2_52 = arith.constant 2 : index
    %c0_53 = arith.constant 0 : index
    %c0_54 = arith.constant 0 : index
    %112 = vector.load %arg6[%c2_52, %c0_53, %c0_54] : memref<3x128x128xf32, #tpu.memory_space<vmem>>, vector<1x128x128xf32>
    %113 = vector.shape_cast %112 : vector<1x128x128xf32> to vector<128x128xf32>
    %cst_55 = arith.constant dense<0.000000e+00> : vector<32x128xf32>
    %114 = tpu.matmul %93, %113, %cst_55 {dimension_numbers = #tpu.dot_dimension_numbers<[1], [0], [0], [1], [0, 0, 1, 1], [], []>} : vector<32x128xf32>, vector<128x128xf32>, vector<32x128xf32> -> vector<32x128xf32>
    %c30_i32 = arith.constant 30 : i32
    %115 = tpu.dynamic_rotate %114 by %c30_i32 dim 0 : vector<32x128xf32>, i32 -> vector<32x128xf32>
    %c14_i32 = arith.constant 14 : i32
    %116 = vector.broadcast %c14_i32 : i32 to vector<32x1xi32>
    %117 = arith.cmpi slt, %16, %116 : vector<32x1xi32>
    %cst_56 = arith.constant 0.000000e+00 : f32
    %118 = vector.shape_cast %117 : vector<32x1xi1> to vector<32x1xi1>
    %119 = vector.broadcast %118 : vector<32x1xi1> to vector<32x128xi1>
    %120 = vector.broadcast %cst_56 : f32 to vector<32x128xf32>
    %121 = arith.select %119, %115, %120 : vector<32x128xi1>, vector<32x128xf32>
    %122 = arith.addf %111, %121 : vector<32x128xf32>
    %cst_57 = arith.constant 0.000000e+00 : f32
    %123 = vector.broadcast %cst_57 : f32 to vector<32x128xf32>
    %124 = arith.cmpf oge, %122, %123 : vector<32x128xf32>
    %cst_58 = arith.constant 0.00999999977 : f32
    %125 = vector.broadcast %cst_58 : f32 to vector<32x128xf32>
    %126 = arith.mulf %125, %122 : vector<32x128xf32>
    %127 = arith.select %124, %122, %126 : vector<32x128xi1>, vector<32x128xf32>
    %cst_59 = arith.constant dense<0.000000e+00> : vector<128xf32>
    %128 = vector.multi_reduction <add>, %127, %cst_59 [0] : vector<32x128xf32> to vector<128xf32>
    %129 = vector.shape_cast %128 : vector<128xf32> to vector<1x128xf32>
    %130 = arith.mulf %127, %127 : vector<32x128xf32>
    %cst_60 = arith.constant dense<0.000000e+00> : vector<128xf32>
    %131 = vector.multi_reduction <add>, %130, %cst_60 [0] : vector<32x128xf32> to vector<128xf32>
    %132 = vector.shape_cast %131 : vector<128xf32> to vector<1x128xf32>
    %133 = tpu.concatenate %129, %132 in 0 : vector<1x128xf32>, vector<1x128xf32> -> vector<2x128xf32>
    %c0_61 = arith.constant 0 : index
    %c0_62 = arith.constant 0 : index
    %134 = vector.load %arg10[%c0_61, %c0_62] : memref<128x8xf32, #tpu.memory_space<vmem>>, vector<128x8xf32>
    %cst_63 = arith.constant dense<0.000000e+00> : vector<2x8xf32>
    %135 = tpu.matmul %133, %134, %cst_63 {dimension_numbers = #tpu.dot_dimension_numbers<[1], [0], [0], [1], [0, 0, 1, 1], [], []>} : vector<2x128xf32>, vector<128x8xf32>, vector<2x8xf32> -> vector<2x8xf32>
    %cst_64 = arith.constant 0.001953125 : f32
    %136 = vector.broadcast %cst_64 : f32 to vector<2x8xf32>
    %137 = arith.mulf %135, %136 : vector<2x8xf32>
    %138 = vector.extract_strided_slice %137 {offsets = [0, 0], sizes = [1, 8], strides = [1, 1]} : vector<2x8xf32> to vector<1x8xf32>
    %139 = vector.extract_strided_slice %137 {offsets = [1, 0], sizes = [1, 8], strides = [1, 1]} : vector<2x8xf32> to vector<1x8xf32>
    %140 = arith.mulf %138, %138 : vector<1x8xf32>
    %141 = arith.subf %139, %140 : vector<1x8xf32>
    %c0_65 = arith.constant 0 : index
    %c0_66 = arith.constant 0 : index
    %142 = vector.load %arg9[%c0_65, %c0_66] : memref<2x8xf32, #tpu.memory_space<vmem>>, vector<2x8xf32>
    %143 = vector.extract_strided_slice %142 {offsets = [0, 0], sizes = [1, 8], strides = [1, 1]} : vector<2x8xf32> to vector<1x8xf32>
    %cst_67 = arith.constant 9.99999974E-6 : f32
    %144 = vector.broadcast %cst_67 : f32 to vector<1x8xf32>
    %145 = arith.addf %141, %144 : vector<1x8xf32>
    %146 = math.rsqrt %145 : vector<1x8xf32>
    %147 = arith.mulf %143, %146 : vector<1x8xf32>
    %148 = vector.extract_strided_slice %142 {offsets = [1, 0], sizes = [1, 8], strides = [1, 1]} : vector<2x8xf32> to vector<1x8xf32>
    %149 = arith.mulf %138, %147 : vector<1x8xf32>
    %150 = arith.subf %148, %149 : vector<1x8xf32>
    %151 = tpu.concatenate %147, %150 in 0 : vector<1x8xf32>, vector<1x8xf32> -> vector<2x8xf32>
    %c0_68 = arith.constant 0 : index
    %c0_69 = arith.constant 0 : index
    %152 = vector.load %arg11[%c0_68, %c0_69] : memref<8x128xf32, #tpu.memory_space<vmem>>, vector<8x128xf32>
    %cst_70 = arith.constant dense<0.000000e+00> : vector<2x128xf32>
    %153 = tpu.matmul %151, %152, %cst_70 {dimension_numbers = #tpu.dot_dimension_numbers<[1], [0], [0], [1], [0, 0, 1, 1], [], []>} : vector<2x8xf32>, vector<8x128xf32>, vector<2x128xf32> -> vector<2x128xf32>
    %154 = vector.extract_strided_slice %153 {offsets = [0, 0], sizes = [1, 128], strides = [1, 1]} : vector<2x128xf32> to vector<1x128xf32>
    %155 = vector.broadcast %154 : vector<1x128xf32> to vector<32x128xf32>
    %156 = arith.mulf %127, %155 : vector<32x128xf32>
    %157 = vector.extract_strided_slice %153 {offsets = [1, 0], sizes = [1, 128], strides = [1, 1]} : vector<2x128xf32> to vector<1x128xf32>
    %158 = vector.broadcast %157 : vector<1x128xf32> to vector<32x128xf32>
    %159 = arith.addf %156, %158 : vector<32x128xf32>
    %160 = arith.addf %27, %159 : vector<32x128xf32>
    %c0_71 = arith.constant 0 : index
    %c0_72 = arith.constant 0 : index
    %161 = vector.load %arg12[%c0_71, %c0_72] : memref<32x128xf32, #tpu.memory_space<vmem>>, vector<32x128xf32>
    tpu.vector_store %arg12[%c0_71, %c0_72], %160 {strides = array<i32>} : memref<32x128xf32, #tpu.memory_space<vmem>>, vector<32x128xf32>,
    return
  }
  func.func @transform_0(%arg0: i32) -> (i32, i32) {
    %c0_i32 = arith.constant 0 : i32
    %c0_i32_0 = arith.constant 0 : i32
    %c0_i32_1 = arith.constant 0 : i32
    return %c0_i32, %c0_i32_0 : i32, i32
  }
  func.func @transform_1(%arg0: i32) -> (i32, i32) {
    %c0_i32 = arith.constant 0 : i32
    %c0_i32_0 = arith.constant 0 : i32
    %c0_i32_1 = arith.constant 0 : i32
    return %c0_i32, %c0_i32_0 : i32, i32
  }
  func.func @transform_2(%arg0: i32) -> (i32, i32) {
    %c0_i32 = arith.constant 0 : i32
    %c0_i32_0 = arith.constant 0 : i32
    %c0_i32_1 = arith.constant 0 : i32
    return %c0_i32, %c0_i32_0 : i32, i32
  }
  func.func @transform_3(%arg0: i32) -> (i32, i32, i32) {
    %c0_i32 = arith.constant 0 : i32
    %c0_i32_0 = arith.constant 0 : i32
    %c0_i32_1 = arith.constant 0 : i32
    %c0_i32_2 = arith.constant 0 : i32
    return %c0_i32, %c0_i32_0, %c0_i32_1 : i32, i32, i32
  }
  func.func @transform_4(%arg0: i32) -> (i32, i32) {
    %c0_i32 = arith.constant 0 : i32
    %c0_i32_0 = arith.constant 0 : i32
    %c0_i32_1 = arith.constant 0 : i32
    return %c0_i32, %c0_i32_0 : i32, i32
  }
  func.func @transform_5(%arg0: i32) -> (i32, i32, i32) {
    %c0_i32 = arith.constant 0 : i32
    %c0_i32_0 = arith.constant 0 : i32
    %c0_i32_1 = arith.constant 0 : i32
    %c0_i32_2 = arith.constant 0 : i32
    return %c0_i32, %c0_i32_0, %c0_i32_1 : i32, i32, i32
  }
  func.func @transform_6(%arg0: i32) -> (i32, i32) {
    %c0_i32 = arith.constant 0 : i32
    %c0_i32_0 = arith.constant 0 : i32
    %c0_i32_1 = arith.constant 0 : i32
    return %c0_i32, %c0_i32_0 : i32, i32
  }
  func.func @transform_7(%arg0: i32) -> (i32, i32) {
    %c0_i32 = arith.constant 0 : i32
    %c0_i32_0 = arith.constant 0 : i32
    %c0_i32_1 = arith.constant 0 : i32
    return %c0_i32, %c0_i32_0 : i32, i32
  }
  func.func @transform_8(%arg0: i32) -> (i32, i32) {
    %c0_i32 = arith.constant 0 : i32
    %c0_i32_0 = arith.constant 0 : i32
    %c0_i32_1 = arith.constant 0 : i32
    return %c0_i32, %c0_i32_0 : i32, i32
  }
  func.func @transform_9(%arg0: i32) -> (i32, i32) {
    %c0_i32 = arith.constant 0 : i32
    %c0_i32_0 = arith.constant 0 : i32
    %c0_i32_1 = arith.constant 0 : i32
    return %c0_i32, %c0_i32_0 : i32, i32
  }
  func.func @transform_10(%arg0: i32) -> (i32, i32) {
    %c0_i32 = arith.constant 0 : i32
    %c0_i32_0 = arith.constant 0 : i32
    %c0_i32_1 = arith.constant 0 : i32
    return %c0_i32, %c0_i32_0 : i32, i32
  }
  func.func @transform_11(%arg0: i32) -> (i32, i32) {
    %c0_i32 = arith.constant 0 : i32
    %c0_i32_0 = arith.constant 0 : i32
    %c0_i32_1 = arith.constant 0 : i32
    return %c0_i32, %c0_i32_0 : i32, i32
  }
}

</mosaic_0001>

<bundles_post_ra>
// kernel: tpu_custom_call.1
= control target key start
LH: loop header
LB: loop body
LE: loop exit
PB: predicated region body
PF: predicated region fallthrough
CT: control target
= control target key end

     0   :  { %16 = vsyncpa [#allocation3], 0  ;;  %s2499_s0 = inlined_call_operand.vmem [shape: f32[32,64], index: 0, kind: input, shape index: {}]   ;;  %s2500_s1 = inlined_call_operand.vmem [shape: f32[64,128], index: 1, kind: input, shape index: {}]   ;;  %s2501_s2 = inlined_call_operand.vmem [shape: f32[1,128], index: 2, kind: input, shape index: {}]   ;;  %s2502_s3 = inlined_call_operand.hbm [shape: f32[3,128,128], index: 3, kind: input, shape index: {}]   ;;  %s2503_s4 = inlined_call_operand.vmem [shape: f32[1,128], index: 4, kind: input, shape index: {}]   ;;  %s2504_s5 = inlined_call_operand.hbm [shape: f32[3,128,128], index: 5, kind: input, shape index: {}]   ;;  %s2505_s6 = inlined_call_operand.vmem [shape: f32[1,128], index: 6, kind: input, shape index: {}]   ;;  %s2506_s7 = inlined_call_operand.vmem [shape: f32[2,8], index: 7, kind: input, shape index: {}]   ;;  %s2507_s8 = inlined_call_operand.vmem [shape: f32[2,8], index: 8, kind: input, shape index: {}]   ;;  %s2508_s9 = inlined_call_operand.vmem [shape: f32[128,8], index: 9, kind: input, shape index: {}]   ;;  %s2509_s10 = inlined_call_operand.vmem [shape: f32[8,128], index: 10, kind: input, shape index: {}]   ;;  %s2510_s11 = inlined_call_operand.hbm [shape: f32[32,128], index: 11, kind: output, shape index: {}]  }
   0x1   :  { %17 = vsyncpa [#allocation6], 0 }
   0x2   :  { %18 = vsyncpa [#allocation4], 0  ;;  %s2054_s17 = smov [#allocation2]  }
   0x3   :  { %s30_s18 = sshll.u32 %s2054_s17, 4  ;;  %s31_s18 = int_to_ptr.vmem [resolvable:$true] %s30_s18 }
   0x4   :  { %s1996_s19 = scalar_lea.vmem %s31_s18, 6144  ;;  %p2001_p1 = scmp.lt.s32.totalorder %s31_s18, %s31_s18 }
   0x5   :  { %p1997_p0 = scmp.ne.s32.totalorder %s31_s18, %s1996_s19  ;;  %p2002_p2 = scmp.lt.s32.totalorder %s1996_s19, %s1996_s19 }
   0x7   :  { %p2003_p3 = por %p2002_p2, %p2001_p1 }
   0x9   :  { %p2004_p4 = pnand %p2003_p3, %p1997_p0 }
   0xb   :  { %2007 = shalt.err (!%p2004_p4)
}
   0xc   :  { %s2055_s20 = smov 128   ;;  %s2056_s21 = smov 8  }
   0xd   :  { %36 = dma.hbm_to_vmem [thread:$0]  %s2502_s3, 6144, %s31_s18, [#allocation3], %s2055_s20, %s2055_s20, %s2056_s21  }
   0xe   :  { %s2057_s24 = smov [#allocation5]  }
   0xf   :  { %s44_s25 = sshll.u32 %s2057_s24, 4  ;;  %s45_s25 = int_to_ptr.vmem [resolvable:$true] %s44_s25 }
  0x10   :  { %s2016_s26 = scalar_lea.vmem %s45_s25, 6144  ;;  %p2021_p6 = scmp.lt.s32.totalorder %s45_s25, %s45_s25 }
  0x11   :  { %p2017_p5 = scmp.ne.s32.totalorder %s45_s25, %s2016_s26  ;;  %p2022_p7 = scmp.lt.s32.totalorder %s2016_s26, %s2016_s26 }
  0x13   :  { %p2023_p8 = por %p2022_p7, %p2021_p6 }
  0x15   :  { %p2024_p9 = pnand %p2023_p8, %p2017_p5 }
  0x17   :  { %2027 = shalt.err (!%p2024_p9)
}
  0x18   :  { %50 = dma.hbm_to_vmem [thread:$0]  %s2504_s5, 6144, %s45_s25, [#allocation6], %s2055_s20, %s2055_s20, %s2056_s21  }
  0x19   :  { %2048 = dma.done.wait [#allocation3], 6144  }
  0x1a   :  { %2049 = vsyncadd [#allocation3], 4294961152 }
  0x1b   :  { %2050 = dma.done.wait [#allocation6], 6144  }
  0x1c   :  { %2051 = vsyncadd [#allocation6], 4294961152  ;;  %v131_v0 = vld [vmem:[%s2500_s1 + $0x38] sm:$0xff]  ;;  %v130_v1 = vld [vmem:[%s2500_s1 + $0x30] sm:$0xff]  ;;  %vm139_vm0 = vcmask 523264   ;;  %vm2059_vm5 = vmmov 0  }
  0x1d   :  { %1647 = vmatprep.subr.mxu0 %v131_v0  ;;  %v129_v2 = vld [vmem:[%s2500_s1 + $0x28] sm:$0xff]  ;;  %v120_v3 = vld [vmem:[%s2499_s0] sm:$0xff]  ;;  %v271_v5 = vld [vmem:[#allocation2 + $0x78] sm:$0xff] }
  0x1e   :  { %1648 = vmatpush3.msra.mxu0 %v131_v0  ;;  %1663 = vmatprep.mubr.msk.f32.mxu0 %vm139_vm0, %v120_v3  ;;  %v128_v4 = vld [vmem:[%s2500_s1 + $0x20] sm:$0xff]  ;;  %v270_v6 = vld [vmem:[#allocation2 + $0x70] sm:$0xff]  ;;  %v127_v7 = vld [vmem:[%s2500_s1 + $0x18] sm:$0xff] }
  0x1f   :  { %1649 = vmatprep.subr.mxu0 %v130_v1  ;;  %1669 = vmatprep.subr.mxu1 %v271_v5  ;;  %v269_v8 = vld [vmem:[#allocation2 + $0x68] sm:$0xff]  ;;  %v126_v9 = vld [vmem:[%s2500_s1 + $0x10] sm:$0xff]  ;;  %v268_v10 = vld [vmem:[#allocation2 + $0x60] sm:$0xff] }
  0x20   :  { %1650 = vmatpush3.msra.mxu0 %v130_v1  ;;  %1670 = vmatpush3.msra.mxu1 %v271_v5  ;;  %v125_v11 = vld [vmem:[%s2500_s1 + $0x8] sm:$0xff]  ;;  %v267_v12 = vld [vmem:[#allocation2 + $0x58] sm:$0xff]  ;;  %v124_v13 = vld [vmem:[%s2500_s1] sm:$0xff] }
  0x21   :  { %1651 = vmatprep.subr.mxu0 %v129_v2  ;;  %1671 = vmatprep.subr.mxu1 %v270_v6  ;;  %v266_v14 = vld [vmem:[#allocation2 + $0x50] sm:$0xff]  ;;  %v121_v15 = vld [vmem:[%s2499_s0 + $0x8] sm:$0xff]  ;;  %v402_v16 = vld [vmem:[#allocation2 + $0xf8] sm:$0xff] }
  0x22   :  { %1652 = vmatpush3.msra.mxu0 %v129_v2  ;;  %1672 = vmatpush3.msra.mxu1 %v270_v6  ;;  %v122_v17 = vld [vmem:[%s2499_s0 + $0x10] sm:$0xff]  ;;  %v265_v19 = vld [vmem:[#allocation2 + $0x48] sm:$0xff]  ;;  %v123_v20 = vld [vmem:[%s2499_s0 + $0x18] sm:$0xff] }
  0x23   :  { %1653 = vmatprep.subr.mxu0 %v128_v4  ;;  %1673 = vmatprep.subr.mxu1 %v269_v8  ;;  %v401_v18 = vld [vmem:[#allocation2 + $0xf0] sm:$0xff]  ;;  %v400_v21 = vld [vmem:[#allocation2 + $0xe8] sm:$0xff]  ;;  %v264_v22 = vld [vmem:[#allocation2 + $0x40] sm:$0xff] }
  0x24   :  { %1654 = vmatpush3.msra.mxu0 %v128_v4  ;;  %1674 = vmatpush3.msra.mxu1 %v269_v8  ;;  %v399_v23 = vld [vmem:[#allocation2 + $0xe0] sm:$0xff]  ;;  %v263_v24 = vld [vmem:[#allocation2 + $0x38] sm:$0xff]  ;;  %v262_v26 = vld [vmem:[#allocation2 + $0x30] sm:$0xff] }
  0x25   :  { %1655 = vmatprep.subr.mxu0 %v127_v7  ;;  %1675 = vmatprep.subr.mxu1 %v268_v10  ;;  %v398_v25 = vld [vmem:[#allocation2 + $0xd8] sm:$0xff]  ;;  %v397_v27 = vld [vmem:[#allocation2 + $0xd0] sm:$0xff]  ;;  %v261_v28 = vld [vmem:[#allocation2 + $0x28] sm:$0xff] }
  0x26   :  { %1656 = vmatpush3.msra.mxu0 %v127_v7  ;;  %1676 = vmatpush3.msra.mxu1 %v268_v10  ;;  %v396_v29 = vld [vmem:[#allocation2 + $0xc8] sm:$0xff]  ;;  %v260_v30 = vld [vmem:[#allocation2 + $0x20] sm:$0xff]  ;;  %v394_v32 = vld [vmem:[#allocation2 + $0xb8] sm:$0xff] }
  0x27   :  { %1657 = vmatprep.subr.mxu0 %v126_v9  ;;  %1677 = vmatprep.subr.mxu1 %v267_v12  ;;  %v395_v31 = vld [vmem:[#allocation2 + $0xc0] sm:$0xff]  ;;  %v393_v33 = vld [vmem:[#allocation2 + $0xb0] sm:$0xff]  ;;  %v392_v34 = vld [vmem:[#allocation2 + $0xa8] sm:$0xff] }
  0x28   :  { %1658 = vmatpush3.msra.mxu0 %v126_v9  ;;  %1678 = vmatpush3.msra.mxu1 %v267_v12  ;;  %v391_v35 = vld [vmem:[#allocation2 + $0xa0] sm:$0xff]  ;;  %v259_v36 = vld [vmem:[#allocation2 + $0x18] sm:$0xff]  ;;  %v258_v38 = vld [vmem:[#allocation2 + $0x10] sm:$0xff] }
  0x29   :  { %1659 = vmatprep.subr.mxu0 %v125_v11  ;;  %1679 = vmatprep.subr.mxu1 %v266_v14  ;;  %v390_v37 = vld [vmem:[#allocation2 + $0x98] sm:$0xff]  ;;  %v389_v39 = vld [vmem:[#allocation2 + $0x90] sm:$0xff]  ;;  %v257_v40 = vld [vmem:[#allocation2 + $0x8] sm:$0xff] }
  0x2a   :  { %1660 = vmatpush3.msra.mxu0 %v125_v11  ;;  %1680 = vmatpush3.msra.mxu1 %v266_v14  ;;  %v388_v41 = vld [vmem:[#allocation2 + $0x88] sm:$0xff]  ;;  %v256_v42 = vld [vmem:[#allocation2] sm:$0xff]  ;;  %v508_v44 = vld [vmem:[#allocation2 + $0x178] sm:$0xff] }
  0x2b   :  { %1661 = vmatprep.subr.mxu0 %v124_v13  ;;  %1681 = vmatprep.subr.mxu1 %v265_v19  ;;  %v387_v43 = vld [vmem:[#allocation2 + $0x80] sm:$0xff]  ;;  %v507_v59 = vld [vmem:[#allocation2 + $0x170] sm:$0xff]  ;;  %v506_v61 = vld [vmem:[#allocation2 + $0x168] sm:$0xff] }
  0x2c   :  { %1662 = vmatpush3.msra.mxu0 %v124_v13  ;;  %1682 = vmatpush3.msra.mxu1 %v265_v19  ;;  %v1468_v45 = vld [vmem:[%s2501_s2] ss:$0 sm:$0xff]  ;;  %v504_v1 = vld [vmem:[#allocation2 + $0x158] sm:$0xff]  ;;  %v503_v2 = vld [vmem:[#allocation2 + $0x150] sm:$0xff]  ;;  %v2058_v13 = vmov 0.0  }
  0x2d   :  { %1664 = vmatmul.mubr.msk.f32.vlgmr.msra.gmra.mxu0 %vm139_vm0, %v121_v15  ;;  %1707 = vmatprep.subr.mxu0 %v402_v16  ;;  %v505_v0 = vld [vmem:[#allocation2 + $0x160] sm:$0xff]  ;;  %v502_v3 = vld [vmem:[#allocation2 + $0x148] sm:$0xff]  ;;  %v500_v5 = vld [vmem:[#allocation2 + $0x138] sm:$0xff] }
  0x2e   :  { %1666 = vmatprep.mubr.msk.f32.mxu0 %vm139_vm0, %v122_v17  ;;  %1708 = vmatpush3.msra.mxu0 %v402_v16  ;;  %v501_v4 = vld [vmem:[#allocation2 + $0x140] sm:$0xff]  ;;  %v499_v6 = vld [vmem:[#allocation2 + $0x130] sm:$0xff]  ;;  %v498_v7 = vld [vmem:[#allocation2 + $0x128] sm:$0xff] }
  0x2f   :  { %1709 = vmatprep.subr.mxu0 %v401_v18  ;;  %1683 = vmatprep.subr.mxu1 %v264_v22  ;;  %v497_v8 = vld [vmem:[#allocation2 + $0x120] sm:$0xff]  ;;  %v496_v9 = vld [vmem:[#allocation2 + $0x118] sm:$0xff]  ;;  %v495_v10 = vld [vmem:[#allocation2 + $0x110] sm:$0xff] }
  0x30   :  { %1710 = vmatpush3.msra.mxu0 %v401_v18  ;;  %1684 = vmatpush3.msra.mxu1 %v264_v22  ;;  %v494_v11 = vld [vmem:[#allocation2 + $0x108] sm:$0xff]  ;;  %v493_v12 = vld [vmem:[#allocation2 + $0x100] sm:$0xff]  ;;  %v2200_v14 = vld [vmem:[%s2508_s9 + $0x78] sm:$0xff] }
  0x31   :  { %1667 = vmatmul.mubr.msk.f32.gmra.mxu0 %vm139_vm0, %v123_v20  ;;  %1711 = vmatprep.subr.mxu0 %v400_v21  ;;  %v2208_v15 = vld [vmem:[%s2508_s9 + $0x70] sm:$0xff]  ;;  %v2215_v16 = vld [vmem:[%s2508_s9 + $0x68] sm:$0xff]  ;;  %v2222_v17 = vld [vmem:[%s2508_s9 + $0x60] sm:$0xff]  ;;  %vm657_vm0 = vcmask 1040384  }
  0x32   :  { %1712 = vmatpush3.msra.mxu0 %v400_v21  ;;  %1685 = vmatprep.subr.mxu1 %v263_v24  ;;  %v2229_v18 = vld [vmem:[%s2508_s9 + $0x58] sm:$0xff]  ;;  %v2236_v19 = vld [vmem:[%s2508_s9 + $0x50] sm:$0xff]  ;;  %v2243_v20 = vld [vmem:[%s2508_s9 + $0x48] sm:$0xff] }
  0x33   :  { %1713 = vmatprep.subr.mxu0 %v399_v23  ;;  %1686 = vmatpush3.msra.mxu1 %v263_v24  ;;  %v2250_v21 = vld [vmem:[%s2508_s9 + $0x40] sm:$0xff]  ;;  %v2256_v22 = vld [vmem:[%s2508_s9 + $0x38] sm:$0xff]  ;;  %v2273_v24 = vld [vmem:[%s2508_s9 + $0x28] sm:$0xff] }
  0x34   :  { %1714 = vmatpush3.msra.mxu0 %v399_v23  ;;  %1687 = vmatprep.subr.mxu1 %v262_v26  ;;  %v2262_v23 = vld [vmem:[%s2508_s9 + $0x30] sm:$0xff] }
  0x35   :  { %1715 = vmatprep.subr.mxu0 %v398_v25  ;;  %1688 = vmatpush3.msra.mxu1 %v262_v26  ;;  %v2287_v26 = vld [vmem:[%s2508_s9 + $0x18] sm:$0xff] }
  0x36   :  { %1716 = vmatpush3.msra.mxu0 %v398_v25  ;;  %1689 = vmatprep.subr.mxu1 %v261_v28  ;;  %v2280_v25 = vld [vmem:[%s2508_s9 + $0x20] sm:$0xff] }
  0x37   :  { %1717 = vmatprep.subr.mxu0 %v397_v27  ;;  %1690 = vmatpush3.msra.mxu1 %v261_v28  ;;  %v2301_v28 = vld [vmem:[%s2508_s9 + $0x8] sm:$0xff] }
  0x38   :  { %1718 = vmatpush3.msra.mxu0 %v397_v27  ;;  %1691 = vmatprep.subr.mxu1 %v260_v30  ;;  %v2294_v27 = vld [vmem:[%s2508_s9 + $0x10] sm:$0xff] }
  0x39   :  { %1719 = vmatprep.subr.mxu0 %v396_v29  ;;  %1692 = vmatpush3.msra.mxu1 %v260_v30 }
  0x3a   :  { %1720 = vmatpush3.msra.mxu0 %v396_v29  ;;  %1693 = vmatprep.subr.mxu1 %v259_v36  ;;  %v2308_v29 = vld [vmem:[%s2508_s9] sm:$0xff] }
  0x3b   :  { %1721 = vmatprep.subr.mxu0 %v395_v31  ;;  %1694 = vmatpush3.msra.mxu1 %v259_v36 }
  0x3c   :  { %1722 = vmatpush3.msra.mxu0 %v395_v31  ;;  %1695 = vmatprep.subr.mxu1 %v258_v38  ;;  %v67_v31 = vlaneseq }
  0x3d   :  { %1723 = vmatprep.subr.mxu0 %v394_v32  ;;  %1696 = vmatpush3.msra.mxu1 %v258_v38 }
  0x3e   :  { %1724 = vmatpush3.msra.mxu0 %v394_v32  ;;  %1697 = vmatprep.subr.mxu1 %v257_v40 }
  0x3f   :  { %1725 = vmatprep.subr.mxu0 %v393_v33  ;;  %1698 = vmatpush3.msra.mxu1 %v257_v40 }
  0x40   :  { %1726 = vmatpush3.msra.mxu0 %v393_v33  ;;  %1699 = vmatprep.subr.mxu1 %v256_v42  ;;  %v2313_v33 = vshrl.u32 %v67_v31, 7 }
  0x41   :  { %1727 = vmatprep.subr.mxu0 %v392_v34  ;;  %1700 = vmatpush3.msra.mxu1 %v256_v42 }
  0x42   :  { %1728 = vmatpush3.msra.mxu0 %v392_v34  ;;  %1745 = vmatprep.subr.mxu1 %v508_v44  ;;  %vm361_vm6 = vcmp.lt.s32.totalorder %v2313_v33, 1  ;;  %vm598_vm9 = vcmp.lt.s32.totalorder %v2313_v33, 7 }
  0x43   :  { %1729 = vmatprep.subr.mxu0 %v391_v35 }
  0x44   :  { %1730 = vmatpush3.msra.mxu0 %v391_v35  ;;  %v76_v35 = vand.u32 15, %v2313_v33 }
  0x45   :  { %1731 = vmatprep.subr.mxu0 %v390_v37 }
  0x46   :  { %1732 = vmatpush3.msra.mxu0 %v390_v37  ;;  %v2317_v37 = vadd.s32 16, %v2313_v33  ;;  %vm366_vm7 = vcmp.ge.s32.totalorder %v76_v35, 1 }
  0x47   :  { %1733 = vmatprep.subr.mxu0 %v389_v39 }
  0x48   :  { %1734 = vmatpush3.msra.mxu0 %v389_v39  ;;  %v90_v42 = vand.u32 15, %v2317_v37 }
  0x49   :  { %1735 = vmatprep.subr.mxu0 %v388_v41 }
  0x4a   :  { %1736 = vmatpush3.msra.mxu0 %v388_v41  ;;  %vm2332_vm8 = vcmp.ge.s32.totalorder %v90_v42, 1 }
  0x4b   :  { %1737 = vmatprep.subr.mxu0 %v387_v43 }
  0x4c   :  { %1738 = vmatpush3.msra.mxu0 %v387_v43 }
  0x4d   :  { %1783 = vmatprep.subr.mxu0 %v2058_v13 }
  0xed   :  { %v1665_v46 = vpop.f32.mrf.mxu0 }
  0xee   :  { %v224_v47 = vadd.f32 %v1665_v46, %v1468_v45  ;;  %v2326_v46 = vadd.s32 24, %v2313_v33 }
  0xef   :  { %v218_v48 = vpop.f32.mrf.mxu0 }
  0xf0   :  { %v219_v49 = vadd.f32 %v1468_v45, %v218_v48  ;;  %v242_v50 = vmul.f32 0.01, %v224_v47  ;;  %vm238_vm1 = vcmp.ge.f32.partialorder %v224_v47, 0.0 }
  0xf1   :  { %v1668_v51 = vpop.f32.mrf.mxu0 }
  0xf2   :  { %vm237_vm2 = vcmp.ge.f32.partialorder %v219_v49, 0.0  ;;  %v241_v52 = vmul.f32 0.01, %v219_v49  ;;  %v234_v53 = vadd.f32 %v1668_v51, %v1468_v45  ;;  %v2180_v58 = vsel %vm238_vm1, %v224_v47, %v242_v50 }
  0xf3   :  { %v228_v54 = vpop.f32.mrf.mxu0  ;;  %v2340_v51 = vadd.s32 8, %v2313_v33  ;;  %vm765_vm1 = vcmask 64512  }
  0xf4   :  { %vm240_vm3 = vcmp.ge.f32.partialorder %v234_v53, 0.0  ;;  %v244_v55 = vmul.f32 0.01, %v234_v53  ;;  %v229_v56 = vadd.f32 %v1468_v45, %v228_v54  ;;  %v2176_v57 = vsel %vm237_vm2, %v219_v49, %v241_v52  ;;  %v1473_v49 = vld [vmem:[%s2503_s4] ss:$0 sm:$0xff] }
  0xf5   :  { %1701 = vmatprep.mubr.f32.mxu1 %v2176_v57  ;;  %1739 = vmatprep.mubr.f32.mxu0 %v2176_v57  ;;  %vm967_vm2 = vcmp.lt.s32.totalorder %v2313_v33, 2 }
  0xf6   :  { %vm239_vm4 = vcmp.ge.f32.partialorder %v229_v56, 0.0  ;;  %v243_v60 = vmul.f32 0.01, %v229_v56  ;;  %1702 = vmatmul.mubr.f32.vlgmr.msra.gmra.mxu1 %v2180_v58  ;;  %1740 = vmatmul.mubr.f32.vlgmr.msra.gmra.mxu0 %v2180_v58  ;;  %v2184_v62 = vsel %vm240_vm3, %v234_v53, %v244_v55  ;;  %vm972_vm3 = vcmp.ge.s32.totalorder %v76_v35, 2 }
  0xf7   :  { %1746 = vmatpush3.msra.mxu1 %v508_v44  ;;  %1784 = vmatpush3.msra.mxu0 %v2200_v14 }
  0xf8   :  { %1747 = vmatprep.subr.mxu1 %v507_v59  ;;  %v2186_v63 = vsel %vm239_vm4, %v229_v56, %v243_v60  ;;  %1785 = vmatprep.subr.mxu0 %v2058_v13  ;;  %v97_v60 = vand.u32 15, %v2326_v46  ;;  %vm974_vm4 = vcmp.ge.s32.totalorder %v90_v42, 2 }
  0xf9   :  { %1748 = vmatpush3.msra.mxu1 %v507_v59  ;;  %1704 = vmatprep.mubr.f32.mxu1 %v2186_v63 }
  0xfa   :  { %1749 = vmatprep.subr.mxu1 %v506_v61  ;;  %1705 = vmatmul.mubr.f32.gmra.mxu1 %v2184_v62  ;;  %vm606_vm10 = vcmp.lt.s32.totalorder %v97_v60, 15 }
  0xfb   :  { %1750 = vmatpush3.msra.mxu1 %v506_v61  ;;  %1777 = vmatprep.mubr.f32.mxu1 %v2176_v57 }
  0xfc   :  { %1751 = vmatprep.subr.mxu1 %v505_v0  ;;  %1742 = vmatprep.mubr.f32.mxu0 %v2186_v63 }
  0xfd   :  { %1752 = vmatpush3.msra.mxu1 %v505_v0  ;;  %1743 = vmatmul.mubr.f32.gmra.mxu0 %v2184_v62 }
  0xfe   :  { %1753 = vmatprep.subr.mxu1 %v504_v1  ;;  %1786 = vmatpush3.msra.mxu0 %v2208_v15 }
  0xff   :  { %1754 = vmatpush3.msra.mxu1 %v504_v1  ;;  %1787 = vmatprep.subr.mxu0 %v2058_v13 }
 0x100   :  { %1755 = vmatprep.subr.mxu1 %v503_v2  ;;  %1788 = vmatpush3.msra.mxu0 %v2215_v16 }
 0x101   :  { %1756 = vmatpush3.msra.mxu1 %v503_v2  ;;  %1789 = vmatprep.subr.mxu0 %v2058_v13 }
 0x102   :  { %1757 = vmatprep.subr.mxu1 %v502_v3  ;;  %1790 = vmatpush3.msra.mxu0 %v2222_v17 }
 0x103   :  { %1758 = vmatpush3.msra.mxu1 %v502_v3  ;;  %1791 = vmatprep.subr.mxu0 %v2058_v13  ;;  %v83_v3 = vand.u32 15, %v2340_v51 }
 0x104   :  { %1759 = vmatprep.subr.mxu1 %v501_v4  ;;  %1792 = vmatpush3.msra.mxu0 %v2229_v18 }
 0x105   :  { %1760 = vmatpush3.msra.mxu1 %v501_v4  ;;  %1793 = vmatprep.subr.mxu0 %v2058_v13  ;;  %vm604_vm11 = vcmp.lt.s32.totalorder %v83_v3, 15 }
 0x106   :  { %1761 = vmatprep.subr.mxu1 %v500_v5  ;;  %1794 = vmatpush3.msra.mxu0 %v2236_v19 }
 0x107   :  { %1762 = vmatpush3.msra.mxu1 %v500_v5  ;;  %1795 = vmatprep.subr.mxu0 %v2058_v13 }
 0x108   :  { %1763 = vmatprep.subr.mxu1 %v499_v6  ;;  %1796 = vmatpush3.msra.mxu0 %v2243_v20 }
 0x109   :  { %1764 = vmatpush3.msra.mxu1 %v499_v6  ;;  %1797 = vmatprep.subr.mxu0 %v2058_v13 }
 0x10a   :  { %1765 = vmatprep.subr.mxu1 %v498_v7  ;;  %1798 = vmatpush3.msra.mxu0 %v2250_v21 }
 0x10b   :  { %1766 = vmatpush3.msra.mxu1 %v498_v7  ;;  %1799 = vmatprep.subr.mxu0 %v2058_v13 }
 0x10c   :  { %1767 = vmatprep.subr.mxu1 %v497_v8  ;;  %1815 = vmatprep.mubr.msk.f32.mxu0 %vm2059_vm5, %v2058_v13 }
 0x10d   :  { %1768 = vmatpush3.msra.mxu1 %v497_v8  ;;  %1800 = vmatpush3.msra.mxu0 %v2256_v22 }
 0x10e   :  { %1769 = vmatprep.subr.mxu1 %v496_v9  ;;  %1801 = vmatprep.subr.mxu0 %v2058_v13 }
 0x10f   :  { %1770 = vmatpush3.msra.mxu1 %v496_v9  ;;  %1802 = vmatpush3.msra.mxu0 %v2262_v23 }
 0x110   :  { %1771 = vmatprep.subr.mxu1 %v495_v10  ;;  %1803 = vmatprep.subr.mxu0 %v2058_v13 }
 0x111   :  { %1772 = vmatpush3.msra.mxu1 %v495_v10  ;;  %1804 = vmatpush3.msra.mxu0 %v2273_v24 }
 0x112   :  { %1773 = vmatprep.subr.mxu1 %v494_v11  ;;  %1805 = vmatprep.subr.mxu0 %v2058_v13 }
 0x113   :  { %1774 = vmatpush3.msra.mxu1 %v494_v11  ;;  %1806 = vmatpush3.msra.mxu0 %v2280_v25 }
 0x114   :  { %1775 = vmatprep.subr.mxu1 %v493_v12  ;;  %1807 = vmatprep.subr.mxu0 %v2058_v13 }
 0x115   :  { %1776 = vmatpush3.msra.mxu1 %v493_v12  ;;  %1808 = vmatpush3.msra.mxu0 %v2287_v26 }
 0x116   :  { %1778 = vmatmul.mubr.f32.vlgmr.msra.gmra.mxu1 %v2180_v58  ;;  %1818 = vmatprep.subr.mxu1 %v2058_v13 }
 0x117   :  { %1780 = vmatprep.mubr.f32.mxu1 %v2186_v63  ;;  %1809 = vmatprep.subr.mxu0 %v2058_v13 }
 0x118   :  { %1810 = vmatpush3.msra.mxu0 %v2294_v27 }
 0x119   :  { %1811 = vmatprep.subr.mxu0 %v2058_v13 }
 0x11a   :  { %1781 = vmatmul.mubr.f32.gmra.mxu1 %v2184_v62  ;;  %1812 = vmatpush3.msra.mxu0 %v2301_v28 }
 0x11b   :  { %1820 = vmatprep.mubr.msk.f32.mxu1 %vm2059_vm5, %v2058_v13  ;;  %1813 = vmatprep.subr.mxu0 %v2058_v13 }
 0x11c   :  { %1814 = vmatpush3.msra.mxu0 %v2308_v29 }
 0x1b6   :  { %v1703_v30 = vpop.f32.mrf.mxu1  ;;  %v1741_v43 = vpop.f32.mrf.mxu0 }
 0x1b7   :  { %v358_v44 = vrot.slane %v1703_v30, 7 }
 0x1b8   :  { %v338_v32 = vpop.f32.mrf.mxu1  ;;  %v469_v50 = vpop.f32.mrf.mxu0 }
 0x1b9   :  { %v357_v39 = vrot.slane %v338_v32, 7 }
 0x1ba   :  { %v1706_v34 = vpop.f32.mrf.mxu1 }
 0x1bb   :  { %v360_v36 = vrot.slane %v1706_v34, 7  ;;  %v364_v55 = vsel %vm361_vm6, %v357_v39, %v358_v44 }
 0x1bc   :  { %v348_v38 = vpop.f32.mrf.mxu1  ;;  %v383_v4 = vadd.f32 %v1473_v49, %v364_v55 }
 0x1bd   :  { %v365_v40 = vsel %vm361_vm6, %v360_v36, %v357_v39  ;;  %v359_v41 = vrot.slane %v348_v38, 7  ;;  %v1744_v56 = vpop.f32.mrf.mxu0 }
 0x1be   :  { %v378_v45 = vsel %vm366_vm7, %v365_v40, 0.0  ;;  %v489_v34 = vadd.f32 %v1741_v43, %v383_v4  ;;  %vm1210_vm7 = vcmp.lt.s32.totalorder %v83_v3, 14 }
 0x1bf   :  { %v363_v47 = vsel %vm361_vm6, %v358_v44, %v359_v41  ;;  %v382_v52 = vadd.f32 %v1473_v49, %v378_v45  ;;  %v362_v53 = vsel %vm361_vm6, %v359_v41, %v360_v36  ;;  %v479_v8 = vpop.f32.mrf.mxu0  ;;  %vm1212_vm6 = vcmp.lt.s32.totalorder %v97_v60, 14 }
 0x1c0   :  { %v380_v59 = vsel %vm2332_vm8, %v363_v47, 0.0  ;;  %v385_v0 = vadd.f32 %v1473_v49, %v362_v53 }
 0x1c1   :  { %v384_v5 = vadd.f32 %v1473_v49, %v380_v59  ;;  %v488_v6 = vadd.f32 %v469_v50, %v382_v52 }
 0x1c2   :  { %v491_v30 = vadd.f32 %v1744_v56, %v385_v0 }
 0x1c3   :  { %v490_v36 = vadd.f32 %v479_v8, %v384_v5 }
 0x1d6   :  { %v1779_v54 = vpop.f32.mrf.mxu1 }
 0x1d7   :  { %v595_v1 = vrot.slane %v1779_v54, 1 }
 0x1d8   :  { %v575_v61 = vpop.f32.mrf.mxu1 }
 0x1d9   :  { %v594_v2 = vrot.slane %v575_v61, 1 }
 0x1da   :  { %v1782_v7 = vpop.f32.mrf.mxu1 }
 0x1db   :  { %v601_v9 = vsel %vm598_vm9, %v594_v2, %v595_v1  ;;  %v597_v10 = vrot.slane %v1782_v7, 1 }
 0x1dc   :  { %v619_v11 = vadd.f32 %v601_v9, %v488_v6  ;;  %v585_v12 = vpop.f32.mrf.mxu1 }
 0x1dd   :  { %v602_v31 = vsel %vm598_vm9, %v597_v10, %v594_v2  ;;  %v596_v32 = vrot.slane %v585_v12, 1 }
 0x1de   :  { %v618_v38 = vsel %vm606_vm10, %v602_v31, 0.0  ;;  %v627_v39 = vmul.f32 0.01, %v619_v11  ;;  %vm623_vm12 = vcmp.ge.f32.partialorder %v619_v11, 0.0 }
 0x1df   :  { %v622_v40 = vadd.f32 %v618_v38, %v491_v30  ;;  %v599_v41 = vsel %vm598_vm9, %v596_v32, %v597_v10  ;;  %v600_v44 = vsel %vm598_vm9, %v595_v1, %v596_v32 }
 0x1e0   :  { %v616_v45 = vsel %vm604_vm11, %v600_v44, 0.0  ;;  %v621_v47 = vadd.f32 %v599_v41, %v490_v36  ;;  %v2363_v50 = vsel %vm623_vm12, %v619_v11, %v627_v39  ;;  %v2387_v41 = vld [vmem:[%s2509_s10] sm:$0xff]  ;;  %v877_v44 = vld [vmem:[#allocation5 + $0x78] sm:$0xff] }
 0x1e1   :  { %v620_v48 = vadd.f32 %v616_v45, %v489_v34  ;;  %v630_v52 = vmul.f32 0.01, %v622_v40  ;;  %vm626_vm15 = vcmp.ge.f32.partialorder %v622_v40, 0.0  ;;  %v644_v55 = vmul.f32 %v2363_v50, %v2363_v50  ;;  %1819 = vmatpush3.msra.mxu1 %v2387_v41  ;;  %v1008_v45 = vld [vmem:[#allocation5 + $0xf8] sm:$0xff] }
 0x1e2   :  { %vm625_vm13 = vcmp.ge.f32.partialorder %v621_v47, 0.0  ;;  %v629_v49 = vmul.f32 0.01, %v621_v47  ;;  %1823 = vmatprep.subr.mxu1 %v877_v44  ;;  %1861 = vmatprep.subr.mxu0 %v1008_v45 }
 0x1e3   :  { %vm624_vm14 = vcmp.ge.f32.partialorder %v620_v48, 0.0  ;;  %v628_v43 = vmul.f32 0.01, %v620_v48  ;;  %v2375_v61 = vsel %vm626_vm15, %v622_v40, %v630_v52  ;;  %v1004_v52 = vld [vmem:[#allocation5 + $0xd8] sm:$0xff] }
 0x1e4   :  { %v2367_v54 = vsel %vm625_vm13, %v621_v47, %v629_v49  ;;  %v647_v4 = vmul.f32 %v2375_v61, %v2375_v61  ;;  %v1007_v47 = vld [vmem:[#allocation5 + $0xf0] sm:$0xff]  ;;  %v1005_v49 = vld [vmem:[#allocation5 + $0xe0] sm:$0xff] }
 0x1e5   :  { %v2365_v53 = vsel %vm624_vm14, %v620_v48, %v628_v43  ;;  %v646_v1 = vmul.f32 %v2367_v54, %v2367_v54  ;;  %v1006_v48 = vld [vmem:[#allocation5 + $0xe8] sm:$0xff]  ;;  %v1003_v43 = vld [vmem:[#allocation5 + $0xd0] sm:$0xff] }
 0x1e6   :  { %v635_v56 = vadd.f32 %v2365_v53, %v2363_v50  ;;  %v645_v59 = vmul.f32 %v2365_v53, %v2365_v53 }
 0x1e8   :  { %v636_v0 = vadd.f32 %v635_v56, %v2367_v54  ;;  %v648_v2 = vadd.f32 %v645_v59, %v644_v55  ;;  %v1002_v55 = vld [vmem:[#allocation5 + $0xc8] sm:$0xff]  ;;  %v1001_v56 = vld [vmem:[#allocation5 + $0xc0] sm:$0xff]  ;;  %v1000_v59 = vld [vmem:[#allocation5 + $0xb8] sm:$0xff] }
 0x1ea   :  { %v637_v5 = vadd.f32 %v636_v0, %v2375_v61  ;;  %v649_v6 = vadd.f32 %v648_v2, %v646_v1  ;;  %v999_v0 = vld [vmem:[#allocation5 + $0xb0] sm:$0xff]  ;;  %v998_v1 = vld [vmem:[#allocation5 + $0xa8] sm:$0xff]  ;;  %v997_v2 = vld [vmem:[#allocation5 + $0xa0] sm:$0xff] }
 0x1ec   :  { %v638_v7 = vrot.slane %v637_v5, 4  ;;  %v650_v8 = vadd.f32 %v649_v6, %v647_v4 }
 0x1ee   :  { %v639_v9 = vadd.f32 %v638_v7, %v637_v5  ;;  %v651_v10 = vrot.slane %v650_v8, 4 }
 0x1f0   :  { %v640_v11 = vrot.slane %v639_v9, 2  ;;  %v652_v12 = vadd.f32 %v651_v10, %v650_v8 }
 0x1f2   :  { %v641_v30 = vadd.f32 %v640_v11, %v639_v9  ;;  %v653_v31 = vrot.slane %v652_v12, 2 }
 0x1f4   :  { %v642_v32 = vrot.slane %v641_v30, 1  ;;  %v654_v34 = vadd.f32 %v653_v31, %v652_v12  ;;  %v751_v12 = vld [vmem:[%s2506_s7] sm:$0x3] }
 0x1f6   :  { %v655_v36 = vrot.slane %v654_v34, 1  ;;  %v643_v38 = vadd.f32 %v642_v32, %v641_v30 }
 0x1f8   :  { %v656_v39 = vadd.f32 %v655_v36, %v654_v34 }
 0x1fa   :  { %v658_v40 = vsel %vm657_vm0, %v643_v38, %v656_v39  ;;  %v876_v39 = vld [vmem:[#allocation5 + $0x70] sm:$0xff] }
 0x1fb   :  { %1816 = vmatmul.mubr.f32.vlgmr.msra.gmra.mxu0 %v658_v40  ;;  %v875_v40 = vld [vmem:[#allocation5 + $0x68] sm:$0xff] }
 0x1fc   :  { %1862 = vmatpush3.msra.mxu0 %v1008_v45  ;;  %v874_v45 = vld [vmem:[#allocation5 + $0x60] sm:$0xff] }
 0x1fd   :  { %1863 = vmatprep.subr.mxu0 %v1007_v47 }
 0x1fe   :  { %1864 = vmatpush3.msra.mxu0 %v1007_v47  ;;  %v873_v47 = vld [vmem:[#allocation5 + $0x58] sm:$0xff] }
 0x1ff   :  { %1865 = vmatprep.subr.mxu0 %v1006_v48 }
 0x200   :  { %1866 = vmatpush3.msra.mxu0 %v1006_v48  ;;  %v872_v48 = vld [vmem:[#allocation5 + $0x50] sm:$0xff] }
 0x201   :  { %1867 = vmatprep.subr.mxu0 %v1005_v49 }
 0x202   :  { %1868 = vmatpush3.msra.mxu0 %v1005_v49  ;;  %v871_v49 = vld [vmem:[#allocation5 + $0x48] sm:$0xff] }
 0x203   :  { %1869 = vmatprep.subr.mxu0 %v1004_v52 }
 0x204   :  { %1870 = vmatpush3.msra.mxu0 %v1004_v52  ;;  %v870_v52 = vld [vmem:[#allocation5 + $0x40] sm:$0xff] }
 0x205   :  { %1871 = vmatprep.subr.mxu0 %v1003_v43 }
 0x206   :  { %1872 = vmatpush3.msra.mxu0 %v1003_v43  ;;  %v869_v43 = vld [vmem:[#allocation5 + $0x38] sm:$0xff] }
 0x207   :  { %1873 = vmatprep.subr.mxu0 %v1002_v55 }
 0x208   :  { %1874 = vmatpush3.msra.mxu0 %v1002_v55  ;;  %v867_v55 = vld [vmem:[#allocation5 + $0x28] sm:$0xff] }
 0x209   :  { %1875 = vmatprep.subr.mxu0 %v1001_v56 }
 0x20a   :  { %1876 = vmatpush3.msra.mxu0 %v1001_v56  ;;  %v866_v56 = vld [vmem:[#allocation5 + $0x20] sm:$0xff] }
 0x20b   :  { %1877 = vmatprep.subr.mxu0 %v1000_v59 }
 0x20c   :  { %1878 = vmatpush3.msra.mxu0 %v1000_v59  ;;  %v865_v59 = vld [vmem:[#allocation5 + $0x18] sm:$0xff] }
 0x20d   :  { %1879 = vmatprep.subr.mxu0 %v999_v0 }
 0x20e   :  { %1880 = vmatpush3.msra.mxu0 %v999_v0  ;;  %v996_v0 = vld [vmem:[#allocation5 + $0x98] sm:$0xff] }
 0x20f   :  { %1881 = vmatprep.subr.mxu0 %v998_v1 }
 0x210   :  { %1882 = vmatpush3.msra.mxu0 %v998_v1  ;;  %v864_v1 = vld [vmem:[#allocation5 + $0x10] sm:$0xff] }
 0x211   :  { %1883 = vmatprep.subr.mxu0 %v997_v2 }
 0x212   :  { %1884 = vmatpush3.msra.mxu0 %v997_v2  ;;  %v995_v2 = vld [vmem:[#allocation5 + $0x90] sm:$0xff] }
 0x213   :  { %1885 = vmatprep.subr.mxu0 %v996_v0 }
 0x214   :  { %1886 = vmatpush3.msra.mxu0 %v996_v0 }
 0x215   :  { %1887 = vmatprep.subr.mxu0 %v995_v2 }
 0x216   :  { %1888 = vmatpush3.msra.mxu0 %v995_v2 }
 0x2bb   :  { %v741_v4 = vpop.f32.mrf.mxu0 }
 0x2bc   :  { %v745_v5 = vmul.f32 0.001953125, %v741_v4  ;;  %v863_v4 = vld [vmem:[#allocation5 + $0x8] sm:$0xff] }
 0x2bd   :  { %v1817_v6 = vpop.f32.mrf.mxu0 }
 0x2be   :  { %v746_v7 = vmul.f32 %v745_v5, %v745_v5  ;;  %v862_v6 = vld [vmem:[#allocation5] sm:$0xff] }
 0x2c0   :  { %v748_v8 = vrot.slane %v746_v7, 7  ;;  %v993_v7 = vld [vmem:[#allocation5 + $0x80] sm:$0xff] }
 0x2c2   :  { %v750_v9 = vsub.f32 %v745_v5, %v748_v8  ;;  %v1114_v8 = vld [vmem:[#allocation5 + $0x178] sm:$0xff] }
 0x2c4   :  { %v752_v10 = vadd.f32 1e-05, %v750_v9  ;;  %v841_v9 = vsub.s32 0, %v2313_v33 }
 0x2c6   :  { %1984 = vrsqrt.f32 %v752_v10  ;;  %v849_v10 = vsub.s32 1, %v2313_v33 }
 0x2d3   :  { %v1985_v11 = vpop.eup %1984 }
 0x2d4   :  { %v755_v30 = vrot.slane %v1985_v11, 1 }
 0x2d6   :  { %v757_v31 = vmul.f32 %v755_v30, %v751_v12 }
 0x2d8   :  { %v758_v32 = vmul.f32 %v757_v31, %v745_v5  ;;  %v994_v5 = vld [vmem:[#allocation5 + $0x88] sm:$0xff] }
 0x2d9   :  { %1889 = vmatprep.subr.mxu0 %v994_v5 }
 0x2da   :  { %v760_v34 = vrot.slane %v758_v32, 7  ;;  %1890 = vmatpush3.msra.mxu0 %v994_v5 }
 0x2db   :  { %1891 = vmatprep.subr.mxu0 %v993_v7 }
 0x2dc   :  { %v762_v36 = vsub.f32 %v751_v12, %v760_v34  ;;  %1892 = vmatpush3.msra.mxu0 %v993_v7 }
 0x2dd   :  { %1937 = vmatprep.subr.mxu0 %v2058_v13 }
 0x2de   :  { %v763_v38 = vsel %vm657_vm0, %v757_v31, %v762_v36 }
 0x2df   :  { %1821 = vmatmul.mubr.msk.f32.vlgmr.msra.gmra.mxu1 %vm765_vm1, %v763_v38 }
 0x2e0   :  { %1824 = vmatpush3.msra.mxu1 %v877_v44  ;;  %v868_v44 = vld [vmem:[#allocation5 + $0x30] sm:$0xff] }
 0x2e1   :  { %1825 = vmatprep.subr.mxu1 %v876_v39 }
 0x2e2   :  { %1826 = vmatpush3.msra.mxu1 %v876_v39 }
 0x2e3   :  { %1827 = vmatprep.subr.mxu1 %v875_v40 }
 0x2e4   :  { %1828 = vmatpush3.msra.mxu1 %v875_v40 }
 0x2e5   :  { %1829 = vmatprep.subr.mxu1 %v874_v45 }
 0x2e6   :  { %1830 = vmatpush3.msra.mxu1 %v874_v45 }
 0x2e7   :  { %1831 = vmatprep.subr.mxu1 %v873_v47 }
 0x2e8   :  { %1832 = vmatpush3.msra.mxu1 %v873_v47  ;;  %v1113_v47 = vld [vmem:[#allocation5 + $0x170] sm:$0xff] }
 0x2e9   :  { %1833 = vmatprep.subr.mxu1 %v872_v48 }
 0x2ea   :  { %1834 = vmatpush3.msra.mxu1 %v872_v48  ;;  %v1109_v48 = vld [vmem:[#allocation5 + $0x150] sm:$0xff] }
 0x2eb   :  { %1835 = vmatprep.subr.mxu1 %v871_v49 }
 0x2ec   :  { %1836 = vmatpush3.msra.mxu1 %v871_v49  ;;  %v1108_v49 = vld [vmem:[#allocation5 + $0x148] sm:$0xff] }
 0x2ed   :  { %1837 = vmatprep.subr.mxu1 %v870_v52 }
 0x2ee   :  { %1838 = vmatpush3.msra.mxu1 %v870_v52  ;;  %v1106_v52 = vld [vmem:[#allocation5 + $0x138] sm:$0xff] }
 0x2ef   :  { %1839 = vmatprep.subr.mxu1 %v869_v43 }
 0x2f0   :  { %1840 = vmatpush3.msra.mxu1 %v869_v43 }
 0x2f1   :  { %1841 = vmatprep.subr.mxu1 %v868_v44 }
 0x2f2   :  { %1842 = vmatpush3.msra.mxu1 %v868_v44 }
 0x2f3   :  { %1843 = vmatprep.subr.mxu1 %v867_v55 }
 0x2f4   :  { %1844 = vmatpush3.msra.mxu1 %v867_v55 }
 0x2f5   :  { %1845 = vmatprep.subr.mxu1 %v866_v56 }
 0x2f6   :  { %1846 = vmatpush3.msra.mxu1 %v866_v56 }
 0x2f7   :  { %1847 = vmatprep.subr.mxu1 %v865_v59 }
 0x2f8   :  { %1848 = vmatpush3.msra.mxu1 %v865_v59 }
 0x2f9   :  { %1849 = vmatprep.subr.mxu1 %v864_v1 }
 0x2fa   :  { %1850 = vmatpush3.msra.mxu1 %v864_v1 }
 0x2fb   :  { %1851 = vmatprep.subr.mxu1 %v863_v4 }
 0x2fc   :  { %1852 = vmatpush3.msra.mxu1 %v863_v4 }
 0x2fd   :  { %1853 = vmatprep.subr.mxu1 %v862_v6 }
 0x2fe   :  { %1854 = vmatpush3.msra.mxu1 %v862_v6 }
 0x2ff   :  { %1899 = vmatprep.subr.mxu1 %v1114_v8 }
 0x39f   :  { %v835_v11 = vpop.f32.mrf.mxu1 }
 0x3a0   :  { %v842_v12 = vrot.slane %v835_v11, %v841_v9  ;;  %v850_v31 = vrot.slane %v835_v11, %v849_v10 }
 0x3a1   :  { %v1822_v30 = vpop.f32.mrf.mxu1 }
 0x3a2   :  { %v843_v32 = vmul.f32 %v842_v12, %v2363_v50  ;;  %v844_v34 = vmul.f32 %v842_v12, %v2365_v53  ;;  %v845_v36 = vmul.f32 %v842_v12, %v2367_v54  ;;  %v846_v40 = vmul.f32 %v842_v12, %v2375_v61  ;;  %v1112_v50 = vld [vmem:[#allocation5 + $0x168] sm:$0xff]  ;;  %v1111_v54 = vld [vmem:[#allocation5 + $0x160] sm:$0xff]  ;;  %v1110_v61 = vld [vmem:[#allocation5 + $0x158] sm:$0xff] }
 0x3a4   :  { %v851_v38 = vadd.f32 %v850_v31, %v843_v32  ;;  %v2405_v39 = vadd.f32 %v850_v31, %v844_v34  ;;  %v2408_v45 = vadd.f32 %v850_v31, %v845_v36  ;;  %v2414_v53 = vadd.f32 %v850_v31, %v846_v40 }
 0x3a6   :  { %1855 = vmatprep.mubr.f32.mxu1 %v851_v38  ;;  %1893 = vmatprep.mubr.f32.mxu0 %v851_v38 }
 0x3a7   :  { %1856 = vmatmul.mubr.f32.vlgmr.msra.gmra.mxu1 %v2405_v39  ;;  %1894 = vmatmul.mubr.f32.vlgmr.msra.gmra.mxu0 %v2405_v39 }
 0x3a8   :  { %1900 = vmatpush3.msra.mxu1 %v1114_v8  ;;  %1858 = vmatprep.mubr.f32.mxu1 %v2408_v45 }
 0x3a9   :  { %1896 = vmatprep.mubr.f32.mxu0 %v2408_v45  ;;  %1901 = vmatprep.subr.mxu1 %v1113_v47 }
 0x3aa   :  { %1902 = vmatpush3.msra.mxu1 %v1113_v47  ;;  %1938 = vmatpush3.msra.mxu0 %v2200_v14  ;;  %v1107_v14 = vld [vmem:[#allocation5 + $0x140] sm:$0xff] }
 0x3ab   :  { %1903 = vmatprep.subr.mxu1 %v1112_v50  ;;  %1859 = vmatmul.mubr.f32.gmra.mxu1 %v2414_v53 }
 0x3ac   :  { %1897 = vmatmul.mubr.f32.gmra.mxu0 %v2414_v53  ;;  %1904 = vmatpush3.msra.mxu1 %v1112_v50 }
 0x3ad   :  { %1905 = vmatprep.subr.mxu1 %v1111_v54  ;;  %1931 = vmatprep.mubr.f32.mxu1 %v851_v38 }
 0x3ae   :  { %1906 = vmatpush3.msra.mxu1 %v1111_v54  ;;  %1939 = vmatprep.subr.mxu0 %v2058_v13 }
 0x3af   :  { %1907 = vmatprep.subr.mxu1 %v1110_v61  ;;  %1940 = vmatpush3.msra.mxu0 %v2208_v15  ;;  %v1105_v15 = vld [vmem:[#allocation5 + $0x130] sm:$0xff] }
 0x3b0   :  { %1908 = vmatpush3.msra.mxu1 %v1110_v61  ;;  %1941 = vmatprep.subr.mxu0 %v2058_v13 }
 0x3b1   :  { %1909 = vmatprep.subr.mxu1 %v1109_v48  ;;  %1942 = vmatpush3.msra.mxu0 %v2215_v16  ;;  %v1104_v16 = vld [vmem:[#allocation5 + $0x128] sm:$0xff] }
 0x3b2   :  { %1910 = vmatpush3.msra.mxu1 %v1109_v48  ;;  %1943 = vmatprep.subr.mxu0 %v2058_v13 }
 0x3b3   :  { %1911 = vmatprep.subr.mxu1 %v1108_v49  ;;  %1944 = vmatpush3.msra.mxu0 %v2222_v17  ;;  %v1103_v17 = vld [vmem:[#allocation5 + $0x120] sm:$0xff] }
 0x3b4   :  { %1912 = vmatpush3.msra.mxu1 %v1108_v49  ;;  %1945 = vmatprep.subr.mxu0 %v2058_v13 }
 0x3b5   :  { %1913 = vmatprep.subr.mxu1 %v1107_v14  ;;  %1946 = vmatpush3.msra.mxu0 %v2229_v18  ;;  %v1102_v18 = vld [vmem:[#allocation5 + $0x118] sm:$0xff] }
 0x3b6   :  { %1914 = vmatpush3.msra.mxu1 %v1107_v14  ;;  %1947 = vmatprep.subr.mxu0 %v2058_v13 }
 0x3b7   :  { %1915 = vmatprep.subr.mxu1 %v1106_v52  ;;  %1948 = vmatpush3.msra.mxu0 %v2236_v19  ;;  %v1101_v19 = vld [vmem:[#allocation5 + $0x110] sm:$0xff] }
 0x3b8   :  { %1916 = vmatpush3.msra.mxu1 %v1106_v52  ;;  %1949 = vmatprep.subr.mxu0 %v2058_v13 }
 0x3b9   :  { %1917 = vmatprep.subr.mxu1 %v1105_v15  ;;  %1950 = vmatpush3.msra.mxu0 %v2243_v20  ;;  %v1100_v20 = vld [vmem:[#allocation5 + $0x108] sm:$0xff] }
 0x3ba   :  { %1918 = vmatpush3.msra.mxu1 %v1105_v15  ;;  %1951 = vmatprep.subr.mxu0 %v2058_v13 }
 0x3bb   :  { %1919 = vmatprep.subr.mxu1 %v1104_v16  ;;  %1952 = vmatpush3.msra.mxu0 %v2250_v21  ;;  %v1099_v21 = vld [vmem:[#allocation5 + $0x100] sm:$0xff] }
 0x3bc   :  { %1920 = vmatpush3.msra.mxu1 %v1104_v16  ;;  %1953 = vmatprep.subr.mxu0 %v2058_v13 }
 0x3bd   :  { %1921 = vmatprep.subr.mxu1 %v1103_v17  ;;  %1954 = vmatpush3.msra.mxu0 %v2256_v22 }
 0x3be   :  { %1922 = vmatpush3.msra.mxu1 %v1103_v17  ;;  %1955 = vmatprep.subr.mxu0 %v2058_v13 }
 0x3bf   :  { %1923 = vmatprep.subr.mxu1 %v1102_v18  ;;  %1956 = vmatpush3.msra.mxu0 %v2262_v23 }
 0x3c0   :  { %1924 = vmatpush3.msra.mxu1 %v1102_v18  ;;  %1957 = vmatprep.subr.mxu0 %v2058_v13 }
 0x3c1   :  { %1925 = vmatprep.subr.mxu1 %v1101_v19  ;;  %1958 = vmatpush3.msra.mxu0 %v2273_v24 }
 0x3c2   :  { %1926 = vmatpush3.msra.mxu1 %v1101_v19  ;;  %1959 = vmatprep.subr.mxu0 %v2058_v13 }
 0x3c3   :  { %1927 = vmatprep.subr.mxu1 %v1100_v20  ;;  %1960 = vmatpush3.msra.mxu0 %v2280_v25 }
 0x3c4   :  { %1928 = vmatpush3.msra.mxu1 %v1100_v20  ;;  %1961 = vmatprep.subr.mxu0 %v2058_v13 }
 0x3c5   :  { %1929 = vmatprep.subr.mxu1 %v1099_v21  ;;  %1962 = vmatpush3.msra.mxu0 %v2287_v26 }
 0x3c6   :  { %1930 = vmatpush3.msra.mxu1 %v1099_v21  ;;  %1963 = vmatprep.subr.mxu0 %v2058_v13 }
 0x3c7   :  { %1932 = vmatmul.mubr.f32.vlgmr.msra.gmra.mxu1 %v2405_v39  ;;  %1964 = vmatpush3.msra.mxu0 %v2294_v27 }
 0x3c8   :  { %1934 = vmatprep.mubr.f32.mxu1 %v2408_v45  ;;  %1965 = vmatprep.subr.mxu0 %v2058_v13 }
 0x3c9   :  { %1966 = vmatpush3.msra.mxu0 %v2301_v28  ;;  %1969 = vmatprep.mubr.msk.f32.mxu0 %vm2059_vm5, %v2058_v13 }
 0x3ca   :  { %1967 = vmatprep.subr.mxu0 %v2058_v13  ;;  %1972 = vmatprep.subr.mxu1 %v2058_v13 }
 0x3cb   :  { %1935 = vmatmul.mubr.f32.gmra.mxu1 %v2414_v53  ;;  %1968 = vmatpush3.msra.mxu0 %v2308_v29 }
 0x3cc   :  { %1973 = vmatpush3.msra.mxu1 %v2387_v41  ;;  %1974 = vmatprep.mubr.msk.f32.mxu1 %vm2059_vm5, %v2058_v13  ;;  %v1475_v13 = vld [vmem:[%s2505_s6] ss:$0 sm:$0xff]  ;;  %vm1204_vm5 = vcmp.lt.s32.totalorder %v2313_v33, 6 }
 0x467   :  { %v1857_v22 = vpop.f32.mrf.mxu1  ;;  %v1895_v44 = vpop.f32.mrf.mxu0 }
 0x468   :  { %v964_v29 = vrot.slane %v1857_v22, 6 }
 0x469   :  { %v944_v23 = vpop.f32.mrf.mxu1  ;;  %v1075_v56 = vpop.f32.mrf.mxu0 }
 0x46a   :  { %v963_v27 = vrot.slane %v944_v23, 6 }
 0x46b   :  { %v1860_v24 = vpop.f32.mrf.mxu1 }
 0x46c   :  { %v966_v25 = vrot.slane %v1860_v24, 6  ;;  %v970_v2 = vsel %vm967_vm2, %v963_v27, %v964_v29  ;;  %v1898_v35 = vpop.f32.mrf.mxu0 }
 0x46d   :  { %v954_v26 = vpop.f32.mrf.mxu1  ;;  %v989_v11 = vadd.f32 %v1475_v13, %v970_v2 }
 0x46e   :  { %v971_v28 = vsel %vm967_vm2, %v966_v25, %v963_v27  ;;  %v965_v43 = vrot.slane %v954_v26, 6  ;;  %v1085_v38 = vpop.f32.mrf.mxu0 }
 0x46f   :  { %v984_v55 = vsel %vm972_vm3, %v971_v28, 0.0  ;;  %v1095_v45 = vadd.f32 %v1895_v44, %v989_v11 }
 0x470   :  { %v969_v41 = vsel %vm967_vm2, %v964_v29, %v965_v43  ;;  %v988_v59 = vadd.f32 %v1475_v13, %v984_v55  ;;  %v968_v0 = vsel %vm967_vm2, %v965_v43, %v966_v25 }
 0x471   :  { %v986_v4 = vsel %vm974_vm4, %v969_v41, 0.0  ;;  %v991_v6 = vadd.f32 %v1475_v13, %v968_v0 }
 0x472   :  { %v990_v37 = vadd.f32 %v1475_v13, %v986_v4  ;;  %v1094_v42 = vadd.f32 %v1075_v56, %v988_v59 }
 0x473   :  { %v1097_v36 = vadd.f32 %v1898_v35, %v991_v6 }
 0x474   :  { %v1096_v47 = vadd.f32 %v1085_v38, %v990_v37 }
 0x487   :  { %v1933_v1 = vpop.f32.mrf.mxu1 }
 0x488   :  { %v1201_v7 = vrot.slane %v1933_v1, 2 }
 0x489   :  { %v1181_v5 = vpop.f32.mrf.mxu1 }
 0x48a   :  { %v1200_v8 = vrot.slane %v1181_v5, 2 }
 0x48b   :  { %v1936_v12 = vpop.f32.mrf.mxu1 }
 0x48c   :  { %v1207_v30 = vsel %vm1204_vm5, %v1200_v8, %v1201_v7  ;;  %v1203_v31 = vrot.slane %v1936_v12, 2  ;;  %v1340_v12 = vld [vmem:[%s2507_s8] sm:$0x3]  ;;  %s2060_s8 = smov [#allocation7]  }
 0x48d   :  { %v1225_v32 = vadd.f32 %v1207_v30, %v1094_v42  ;;  %v1191_v34 = vpop.f32.mrf.mxu1  ;;  %s1455_s3 = sshll.u32 %s2060_s8, 4  ;;  %s1456_s3 = int_to_ptr.vmem [resolvable:$true] %s1455_s3 }
 0x48e   :  { %v1208_v39 = vsel %vm1204_vm5, %v1203_v31, %v1200_v8  ;;  %v1202_v40 = vrot.slane %v1191_v34, 2  ;;  %s2028_s29 = scalar_lea.vmem %s1456_s3, 512  ;;  %p2033_p11 = scmp.lt.s32.totalorder %s1456_s3, %s1456_s3 }
 0x48f   :  { %v1224_v50 = vsel %vm1212_vm6, %v1208_v39, 0.0  ;;  %v1233_v53 = vmul.f32 0.01, %v1225_v32  ;;  %vm1229_vm8 = vcmp.ge.f32.partialorder %v1225_v32, 0.0  ;;  %p2029_p10 = scmp.ne.s32.totalorder %s1456_s3, %s2028_s29  ;;  %p2034_p12 = scmp.lt.s32.totalorder %s2028_s29, %s2028_s29 }
 0x490   :  { %v1228_v54 = vadd.f32 %v1224_v50, %v1097_v36  ;;  %v1205_v46 = vsel %vm1204_vm5, %v1202_v40, %v1203_v31  ;;  %v1206_v60 = vsel %vm1204_vm5, %v1201_v7, %v1202_v40 }
 0x491   :  { %v1222_v61 = vsel %vm1210_vm7, %v1206_v60, 0.0  ;;  %v1227_v48 = vadd.f32 %v1205_v46, %v1096_v47  ;;  %v1237_v52 = vsel %vm1229_vm8, %v1225_v32, %v1233_v53  ;;  %p2035_p13 = por %p2034_p12, %p2033_p11 }
 0x492   :  { %v1226_v49 = vadd.f32 %v1222_v61, %v1095_v45  ;;  %v1236_v51 = vmul.f32 0.01, %v1228_v54  ;;  %vm1232_vm11 = vcmp.ge.f32.partialorder %v1228_v54, 0.0  ;;  %v1250_v17 = vmul.f32 %v1237_v52, %v1237_v52 }
 0x493   :  { %vm1231_vm9 = vcmp.ge.f32.partialorder %v1227_v48, 0.0  ;;  %v1235_v14 = vmul.f32 0.01, %v1227_v48  ;;  %p2036_p0 = pnand %p2035_p13, %p2029_p10 }
 0x494   :  { %vm1230_vm10 = vcmp.ge.f32.partialorder %v1226_v49, 0.0  ;;  %v1234_v3 = vmul.f32 0.01, %v1226_v49  ;;  %v1240_v20 = vsel %vm1232_vm11, %v1228_v54, %v1236_v51 }
 0x495   :  { %v1239_v16 = vsel %vm1231_vm9, %v1227_v48, %v1235_v14  ;;  %v1253_v24 = vmul.f32 %v1240_v20, %v1240_v20 }
 0x496   :  { %v1238_v15 = vsel %vm1230_vm10, %v1226_v49, %v1234_v3  ;;  %v1252_v22 = vmul.f32 %v1239_v16, %v1239_v16 }
 0x497   :  { %v1241_v18 = vadd.f32 %v1238_v15, %v1237_v52  ;;  %v1251_v19 = vmul.f32 %v1238_v15, %v1238_v15 }
 0x499   :  { %v1242_v21 = vadd.f32 %v1241_v18, %v1239_v16  ;;  %v1254_v23 = vadd.f32 %v1251_v19, %v1250_v17 }
 0x49b   :  { %v1243_v25 = vadd.f32 %v1242_v21, %v1240_v20  ;;  %v1255_v26 = vadd.f32 %v1254_v23, %v1252_v22 }
 0x49d   :  { %v1244_v27 = vrot.slane %v1243_v25, 4  ;;  %v1256_v28 = vadd.f32 %v1255_v26, %v1253_v24 }
 0x49f   :  { %v1245_v43 = vadd.f32 %v1244_v27, %v1243_v25  ;;  %v1257_v44 = vrot.slane %v1256_v28, 4 }
 0x4a1   :  { %v1246_v29 = vrot.slane %v1245_v43, 2  ;;  %v1258_v55 = vadd.f32 %v1257_v44, %v1256_v28 }
 0x4a3   :  { %v1247_v41 = vadd.f32 %v1246_v29, %v1245_v43  ;;  %v1259_v13 = vrot.slane %v1258_v55, 2 }
 0x4a5   :  { %v1248_v56 = vrot.slane %v1247_v41, 1  ;;  %v1260_v59 = vadd.f32 %v1259_v13, %v1258_v55 }
 0x4a7   :  { %v1261_v0 = vrot.slane %v1260_v59, 1  ;;  %v1249_v1 = vadd.f32 %v1248_v56, %v1247_v41 }
 0x4a9   :  { %v1262_v2 = vadd.f32 %v1261_v0, %v1260_v59 }
 0x4ab   :  { %v1263_v4 = vsel %vm657_vm0, %v1249_v1, %v1262_v2 }
 0x4ac   :  { %1970 = vmatmul.mubr.f32.vlgmr.msra.gmra.mxu0 %v1263_v4 }
 0x56c   :  { %v1330_v5 = vpop.f32.mrf.mxu0 }
 0x56d   :  { %v1334_v35 = vmul.f32 0.001953125, %v1330_v5 }
 0x56e   :  { %v1971_v6 = vpop.f32.mrf.mxu0 }
 0x56f   :  { %v1335_v7 = vmul.f32 %v1334_v35, %v1334_v35 }
 0x571   :  { %v1337_v8 = vrot.slane %v1335_v7, 7 }
 0x573   :  { %v1339_v11 = vsub.f32 %v1334_v35, %v1337_v8 }
 0x575   :  { %v1341_v37 = vadd.f32 1e-05, %v1339_v11 }
 0x577   :  { %1986 = vrsqrt.f32 %v1341_v37 }
 0x584   :  { %v1987_v42 = vpop.eup %1986 }
 0x585   :  { %v1344_v30 = vrot.slane %v1987_v42, 1 }
 0x587   :  { %v1346_v31 = vmul.f32 %v1344_v30, %v1340_v12 }
 0x589   :  { %v1347_v32 = vmul.f32 %v1346_v31, %v1334_v35 }
 0x58b   :  { %v1349_v34 = vrot.slane %v1347_v32, 7 }
 0x58d   :  { %v1351_v36 = vsub.f32 %v1340_v12, %v1349_v34 }
 0x58f   :  { %v1352_v38 = vsel %vm657_vm0, %v1346_v31, %v1351_v36 }
 0x590   :  { %1975 = vmatmul.mubr.msk.f32.vlgmr.msra.gmra.mxu1 %vm765_vm1, %v1352_v38 }
 0x650   :  { %v1422_v39 = vpop.f32.mrf.mxu1 }
 0x651   :  { %v1429_v40 = vrot.slane %v1422_v39, %v841_v9  ;;  %v1437_v45 = vrot.slane %v1422_v39, %v849_v10 }
 0x652   :  { %v1976_v47 = vpop.f32.mrf.mxu1 }
 0x653   :  { %v1430_v50 = vmul.f32 %v1429_v40, %v1237_v52  ;;  %v1431_v53 = vmul.f32 %v1429_v40, %v1238_v15  ;;  %v1432_v54 = vmul.f32 %v1429_v40, %v1239_v16  ;;  %v1433_v46 = vmul.f32 %v1429_v40, %v1240_v20 }
 0x655   :  { %v1438_v60 = vadd.f32 %v1437_v45, %v1430_v50  ;;  %v1439_v61 = vadd.f32 %v1437_v45, %v1431_v53  ;;  %v1440_v48 = vadd.f32 %v1437_v45, %v1432_v54  ;;  %v1441_v49 = vadd.f32 %v1437_v45, %v1433_v46 }
 0x657   :  { %v1442_v14 = vadd.f32 %v1438_v60, %v2176_v57  ;;  %v1443_v51 = vadd.f32 %v1439_v61, %v2180_v58  ;;  %v1444_v9 = vadd.f32 %v1440_v48, %v2186_v63  ;;  %v1445_v33 = vadd.f32 %v1441_v49, %v2184_v62 }
 0x659   :  { %1446 = vst [vmem:[#allocation7] sm:$0xff] %v1442_v14  ;;  %1447 = vst [vmem:[#allocation7 + $0x8] sm:$0xff] %v1443_v51 }
 0x65a   :  { %1448 = vst [vmem:[#allocation7 + $0x10] sm:$0xff] %v1444_v9  ;;  %1449 = vst [vmem:[#allocation7 + $0x18] sm:$0xff] %v1445_v33 }
 0x65b   :  { %2039 = shalt.err (!%p2036_p0)
}
 0x65c   :  { %1461 = dma.vmem_to_hbm [thread:$0]  %s1456_s3, 512, %s2510_s11, [#allocation4], %s2055_s20, %s2055_s20, %s2056_s21  }
 0x65d   :  { %2052 = dma.done.wait [#allocation4], 512  }
 0x65e   :  { %2053 = vsyncadd [#allocation4], 4294966784 }
 0x65f   :  { %1465 = vsyncpa [#allocation3], 1 }
 0x660   :  { %1466 = vsyncpa [#allocation6], 1 }
 0x661   :  { %1467 = vsyncpa [#allocation4], 1 }

</bundles_post_ra>
